<compile_context>
chip_gen: v6e
topology: v6e:2x2x1
jax: 0.10.0
libtpu: 0.0.40
codegen_flags: <defaults>
</compile_context>

<pallas_src>
import jax
import jax.numpy as jnp
import numpy as np
from jax import lax
from jax.experimental import pallas as pl
from jax.experimental.pallas import tpu as pltpu


# ----------------------------------------------------------------------------- kernel

def _make_msdw_kernel(K, C):
    """Fused multi-scale depthwise conv in packed (Bt, H, W*C) layout.

    Per tap (dh, dw): the H-shift is a sublane roll, the W-shift a lane roll by
    (P-dw)*C.  'Same' zero padding is realized by zeros folded into the packed
    weights (rows/lanes whose source pixel is out of range carry weight 0), so both
    rolls may wrap freely and the kernel needs no per-tap masking at all.
    """
    P = K // 2

    def kernel(x_ref, w_ref, b_ref, o_ref):
        # x_ref : (Bt, H, WC)    packed input tile (Bt images)
        # w_ref : (K*K, H, WC)   packed per-tap weights, H/W boundary masks folded in
        # b_ref : (H, WC)        packed bias (pre-broadcast over H)
        # o_ref : (Bt, H, WC)    packed output tile (lane-dense stores)
        Bt, H, WC = o_ref.shape
        f32 = jnp.float32

        bv = b_ref[...]                                     # hoisted out of all loops

        def per_image(b, carry):
            xv = x_ref[b].astype(f32)                       # (H, WC) read ONCE per image
            acc = bv                                        # bias folded into the init
            for dh in range(K):                             # 7 sublane rolls (XLU)
                s_h = (P - dh) % H
                xs = xv if s_h == 0 else pltpu.roll(xv, shift=s_h, axis=0)
                for dw in range(K):                         # 49 lane rolls of 2 vregs
                    s_w = ((P - dw) * C) % WC
                    xt = xs if s_w == 0 else pltpu.roll(xs, shift=s_w, axis=1)
                    # static-index (H, WC) weight load -> vld slot, not XLU broadcast
                    acc = acc + xt * w_ref[dh * K + dw]     # 2 VPU ops per tap
            o_ref[b] = acc.astype(o_ref.dtype)              # unmasked lane-dense vst
            return carry

        lax.fori_loop(0, Bt, per_image, 0, unroll=True)

    return kernel


# ----------------------------------------------------------------------------- params

def msdw_split_channels(dim, dw_sizes):
    n = len(dw_sizes)
    return [dim - dim // n * (n - 1)] + [dim // n] * (n - 1)


def make_msdw_params(key, dim, dw_sizes=(1, 3, 5, 7)):
    """Fused (K, K, C) depthwise weight + (C,) bias (PyTorch Conv2d-equivalent init).

    Each per-group k x k kernel (k in dw_sizes, padding k//2) is embedded centered in a
    single K x K (K = max k) depthwise kernel with zeros elsewhere — mathematically
    identical to MSDWConv.forward (split / per-group depthwise conv / concat).
    """
    K = max(dw_sizes)
    chans = msdw_split_channels(dim, dw_sizes)
    w_full = jnp.zeros((K, K, dim), jnp.float32)
    biases = []
    off = 0
    for k, c in zip(dw_sizes, chans):
        key, kw, kb = jax.random.split(key, 3)
        bound = 1.0 / np.sqrt(k * k)                     # depthwise Conv2d fan-in init
        w = jax.random.uniform(kw, (k, k, c), jnp.float32, -bound, bound)
        b = jax.random.uniform(kb, (c,), jnp.float32, -bound, bound)
        pad = (K - k) // 2
        w_full = w_full.at[pad:pad + k, pad:pad + k, off:off + c].set(w)
        biases.append(b)
        off += c
    return w_full, jnp.concatenate(biases, axis=0)


def pack_msdw_params(w_full, bias, H, W):
    """Pack for the kernel: lane j -> (w = j // C, c = j % C); taps pre-broadcast over H.

    Both 'same'-padding boundary conditions are folded into the weights:
      * W edge: tap (dh, dw) reads column w + (dw - P); lanes whose source column falls
        outside [0, W) get weight 0 (the in-kernel lane roll may wrap freely).
      * H edge: output row h reads input row h + (dh - P); rows whose source row falls
        outside [0, H) get weight 0 (the in-kernel sublane roll may wrap freely).
    """
    K, _, C = w_full.shape
    P = K // 2
    WC = W * C
    wf = np.asarray(w_full, np.float32)
    wcol = np.arange(WC) // C
    hrow = np.arange(H)
    w_packed = np.zeros((K * K, H, WC), np.float32)
    for dh in range(K):
        hmask = ((hrow + dh - P >= 0) & (hrow + dh - P < H)).astype(np.float32)      # (H,)
        for dw in range(K):
            wmask = ((wcol + dw - P >= 0) & (wcol + dw - P < W)).astype(np.float32)  # (WC,)
            wrow = np.tile(wf[dh, dw], W) * wmask                                    # (WC,)
            w_packed[dh * K + dw] = hmask[:, None] * wrow[None, :]
    b_packed = np.broadcast_to(np.tile(np.asarray(bias, np.float32), W), (H, WC)).copy()
    return jnp.asarray(w_packed), jnp.asarray(b_packed)


# ----------------------------------------------------------------------------- wrappers

def msdwconv_nhwc(x_nhwc, w_packed, b_packed, K, bt=8):
    """MSDWConv forward, channels-last. x_nhwc: (B, H, W, C) -> (B, H, W, C).

    (W, C) is merged onto the 128-lane axis (free relayout for a contiguous NHWC array);
    best performance when W*C is a multiple of 128 and H a multiple of 8 (demo: 16*8=128).
    The grid iterates over blocks of Bt images to amortize the fixed per-grid-step cost;
    weights/bias use constant index_maps so they stay VMEM-resident across steps.
    """
    B, H, W, C = x_nhwc.shape
    WC = W * C
    Bt = max(1, min(bt, B))
    Bp = pl.cdiv(B, Bt) * Bt

    x_p = x_nhwc.reshape(B, H, WC)                       # layout plumbing only
    if Bp != B:
        x_p = jnp.pad(x_p, ((0, Bp - B), (0, 0), (0, 0)))

    out_p = pl.pallas_call(
        _make_msdw_kernel(K, C),
        out_shape=jax.ShapeDtypeStruct((Bp, H, WC), x_nhwc.dtype),
        grid=(Bp // Bt,),
        in_specs=[
            pl.BlockSpec((Bt, H, WC), lambda g: (g, 0, 0)),
            pl.BlockSpec((K * K, H, WC), lambda g: (0, 0, 0)),
            pl.BlockSpec((H, WC), lambda g: (0, 0)),
        ],
        out_specs=pl.BlockSpec((Bt, H, WC), lambda g: (g, 0, 0)),
        compiler_params=pltpu.CompilerParams(
            dimension_semantics=("parallel",),
            # 2*(in tile + out tile) + weights is a few MiB even at Bt=64 — comfortably
            # under the 32 MiB scoped default and v7x's 64 MiB physical VMEM.
            vmem_limit_bytes=32 * 1024 * 1024,
        ),
    )(x_p, w_packed, b_packed)

    if Bp != B:
        out_p = out_p[:B]
    return out_p.reshape(B, H, W, C)


def msdwconv_nchw(x_nchw, w_packed, b_packed, K, bt=8):
    """PyTorch-interface parity (MSDWConv.forward takes NCHW). Prefer msdwconv_nhwc and
    keep the surrounding model channels-last so no transpose HBM round-trips are needed."""
    x = jnp.transpose(x_nchw, (0, 2, 3, 1))
    y = msdwconv_nhwc(x, w_packed, b_packed, K, bt)
    return jnp.transpose(y, (0, 3, 1, 2))


def _reference_nhwc(x_nhwc, w_full, bias):
    """Pure-JAX reference (single fused depthwise conv, channels-last)."""
    K = w_full.shape[0]
    P = K // 2
    C = x_nhwc.shape[-1]
    y = jax.lax.conv_general_dilated(
        x_nhwc, w_full.reshape(K, K, 1, C),
        window_strides=(1, 1), padding=((P, P), (P, P)),
        dimension_numbers=("NHWC", "HWIO", "NHWC"),
        feature_group_count=C)
    return y + bias.reshape(1, 1, 1, C)


# ----------------------------------------------------------------------------- demo

if __name__ == "__main__":
    key = jax.random.PRNGKey(0)
    kx, kp = jax.random.split(key)

    B, dim, H, W = 2, 8, 16, 16            # W * dim = 128 -> exactly one full lane row
    dw_sizes = (1, 3, 5, 7)
    K = max(dw_sizes)

    x = jax.random.normal(kx, (B, H, W, dim), jnp.float32)   # channels-last, like MAB tensors
    w_full, bias = make_msdw_params(kp, dim, dw_sizes)
    w_packed, b_packed = pack_msdw_params(w_full, bias, H, W)

    fwd = jax.jit(msdwconv_nhwc, static_argnames=("K", "bt"))

    # f32 path
    out = jax.block_until_ready(fwd(x, w_packed, b_packed, K=K, bt=8))
    ref = jax.block_until_ready(_reference_nhwc(x, w_full, bias))
    np.testing.assert_allclose(np.asarray(out), np.asarray(ref), atol=1e-5, rtol=1e-5)
    assert out.shape == (B, H, W, dim)

    # bf16 input path (recommended on v6e/v7x once HBM-bound; on v5e prefer f32 in/out).
    xb = x.astype(jnp.bfloat16)
    outb = jax.block_until_ready(fwd(xb, w_packed, b_packed, K=K, bt=8))
    refb = jax.block_until_ready(_reference_nhwc(xb.astype(jnp.float32), w_full, bias))
    np.testing.assert_allclose(np.asarray(outb.astype(jnp.float32)), np.asarray(refb),
                               atol=2e-2, rtol=2e-2)

    print("KERNEL_OK")
</pallas_src>

<mosaic_0001>
module attributes {stable_mosaic.version = 11 : i64} {
  func.func @kernel(%arg0: i32, %arg1: memref<2x16x128xf32, #tpu.memory_space<vmem>>, %arg2: memref<49x16x128xf32, #tpu.memory_space<vmem>>, %arg3: memref<16x128xf32, #tpu.memory_space<vmem>>, %arg4: memref<2x16x128xf32, #tpu.memory_space<vmem>>) attributes {dimension_semantics = [#tpu.dimension_semantics<parallel>], iteration_bounds = array<i64: 1>, scalar_prefetch = 0 : i64, scratch_operands = 0 : i64, tpu.core_type = #tpu.core_type<tc>, window_params = [{transform_indices = @transform_0, window_bounds = array<i64: 2, 16, 128>}, {pipeline_mode = #tpu.pipeline_mode<synchronous>, transform_indices = @transform_1, window_bounds = array<i64: 49, 16, 128>}, {pipeline_mode = #tpu.pipeline_mode<synchronous>, transform_indices = @transform_2, window_bounds = array<i64: 16, 128>}, {transform_indices = @transform_3, window_bounds = array<i64: 2, 16, 128>}]} {
    %c0 = arith.constant 0 : index
    %c0_0 = arith.constant 0 : index
    %0 = vector.load %arg3[%c0, %c0_0] : memref<16x128xf32, #tpu.memory_space<vmem>>, vector<16x128xf32>
    %c0_i32 = arith.constant 0 : i32
    %1 = arith.index_cast %c0_i32 : i32 to index
    %c0_1 = arith.constant 0 : index
    %c0_2 = arith.constant 0 : index
    %2 = vector.load %arg1[%1, %c0_1, %c0_2] : memref<2x16x128xf32, #tpu.memory_space<vmem>>, vector<1x16x128xf32>
    %3 = vector.shape_cast %2 : vector<1x16x128xf32> to vector<16x128xf32>
    %c3_i32 = arith.constant 3 : i32
    %4 = tpu.dynamic_rotate %3 by %c3_i32 dim 0 : vector<16x128xf32>, i32 -> vector<16x128xf32>
    %c24_i32 = arith.constant 24 : i32
    %5 = tpu.dynamic_rotate %4 by %c24_i32 dim 1 : vector<16x128xf32>, i32 -> vector<16x128xf32>
    %c0_3 = arith.constant 0 : index
    %c0_4 = arith.constant 0 : index
    %c0_5 = arith.constant 0 : index
    %6 = vector.load %arg2[%c0_3, %c0_4, %c0_5] : memref<49x16x128xf32, #tpu.memory_space<vmem>>, vector<1x16x128xf32>
    %7 = vector.shape_cast %6 : vector<1x16x128xf32> to vector<16x128xf32>
    %8 = arith.mulf %5, %7 : vector<16x128xf32>
    %9 = arith.addf %0, %8 : vector<16x128xf32>
    %c16_i32 = arith.constant 16 : i32
    %10 = tpu.dynamic_rotate %4 by %c16_i32 dim 1 : vector<16x128xf32>, i32 -> vector<16x128xf32>
    %c1 = arith.constant 1 : index
    %c0_6 = arith.constant 0 : index
    %c0_7 = arith.constant 0 : index
    %11 = vector.load %arg2[%c1, %c0_6, %c0_7] : memref<49x16x128xf32, #tpu.memory_space<vmem>>, vector<1x16x128xf32>
    %12 = vector.shape_cast %11 : vector<1x16x128xf32> to vector<16x128xf32>
    %13 = arith.mulf %10, %12 : vector<16x128xf32>
    %14 = arith.addf %9, %13 : vector<16x128xf32>
    %c8_i32 = arith.constant 8 : i32
    %15 = tpu.dynamic_rotate %4 by %c8_i32 dim 1 : vector<16x128xf32>, i32 -> vector<16x128xf32>
    %c2 = arith.constant 2 : index
    %c0_8 = arith.constant 0 : index
    %c0_9 = arith.constant 0 : index
    %16 = vector.load %arg2[%c2, %c0_8, %c0_9] : memref<49x16x128xf32, #tpu.memory_space<vmem>>, vector<1x16x128xf32>
    %17 = vector.shape_cast %16 : vector<1x16x128xf32> to vector<16x128xf32>
    %18 = arith.mulf %15, %17 : vector<16x128xf32>
    %19 = arith.addf %14, %18 : vector<16x128xf32>
    %c3 = arith.constant 3 : index
    %c0_10 = arith.constant 0 : index
    %c0_11 = arith.constant 0 : index
    %20 = vector.load %arg2[%c3, %c0_10, %c0_11] : memref<49x16x128xf32, #tpu.memory_space<vmem>>, vector<1x16x128xf32>
    %21 = vector.shape_cast %20 : vector<1x16x128xf32> to vector<16x128xf32>
    %22 = arith.mulf %4, %21 : vector<16x128xf32>
    %23 = arith.addf %19, %22 : vector<16x128xf32>
    %c120_i32 = arith.constant 120 : i32
    %24 = tpu.dynamic_rotate %4 by %c120_i32 dim 1 : vector<16x128xf32>, i32 -> vector<16x128xf32>
    %c4 = arith.constant 4 : index
    %c0_12 = arith.constant 0 : index
    %c0_13 = arith.constant 0 : index
    %25 = vector.load %arg2[%c4, %c0_12, %c0_13] : memref<49x16x128xf32, #tpu.memory_space<vmem>>, vector<1x16x128xf32>
    %26 = vector.shape_cast %25 : vector<1x16x128xf32> to vector<16x128xf32>
    %27 = arith.mulf %24, %26 : vector<16x128xf32>
    %28 = arith.addf %23, %27 : vector<16x128xf32>
    %c112_i32 = arith.constant 112 : i32
    %29 = tpu.dynamic_rotate %4 by %c112_i32 dim 1 : vector<16x128xf32>, i32 -> vector<16x128xf32>
    %c5 = arith.constant 5 : index
    %c0_14 = arith.constant 0 : index
    %c0_15 = arith.constant 0 : index
    %30 = vector.load %arg2[%c5, %c0_14, %c0_15] : memref<49x16x128xf32, #tpu.memory_space<vmem>>, vector<1x16x128xf32>
    %31 = vector.shape_cast %30 : vector<1x16x128xf32> to vector<16x128xf32>
    %32 = arith.mulf %29, %31 : vector<16x128xf32>
    %33 = arith.addf %28, %32 : vector<16x128xf32>
    %c104_i32 = arith.constant 104 : i32
    %34 = tpu.dynamic_rotate %4 by %c104_i32 dim 1 : vector<16x128xf32>, i32 -> vector<16x128xf32>
    %c6 = arith.constant 6 : index
    %c0_16 = arith.constant 0 : index
    %c0_17 = arith.constant 0 : index
    %35 = vector.load %arg2[%c6, %c0_16, %c0_17] : memref<49x16x128xf32, #tpu.memory_space<vmem>>, vector<1x16x128xf32>
    %36 = vector.shape_cast %35 : vector<1x16x128xf32> to vector<16x128xf32>
    %37 = arith.mulf %34, %36 : vector<16x128xf32>
    %38 = arith.addf %33, %37 : vector<16x128xf32>
    %c2_i32 = arith.constant 2 : i32
    %39 = tpu.dynamic_rotate %3 by %c2_i32 dim 0 : vector<16x128xf32>, i32 -> vector<16x128xf32>
    %c24_i32_18 = arith.constant 24 : i32
    %40 = tpu.dynamic_rotate %39 by %c24_i32_18 dim 1 : vector<16x128xf32>, i32 -> vector<16x128xf32>
    %c7 = arith.constant 7 : index
    %c0_19 = arith.constant 0 : index
    %c0_20 = arith.constant 0 : index
    %41 = vector.load %arg2[%c7, %c0_19, %c0_20] : memref<49x16x128xf32, #tpu.memory_space<vmem>>, vector<1x16x128xf32>
    %42 = vector.shape_cast %41 : vector<1x16x128xf32> to vector<16x128xf32>
    %43 = arith.mulf %40, %42 : vector<16x128xf32>
    %44 = arith.addf %38, %43 : vector<16x128xf32>
    %c16_i32_21 = arith.constant 16 : i32
    %45 = tpu.dynamic_rotate %39 by %c16_i32_21 dim 1 : vector<16x128xf32>, i32 -> vector<16x128xf32>
    %c8 = arith.constant 8 : index
    %c0_22 = arith.constant 0 : index
    %c0_23 = arith.constant 0 : index
    %46 = vector.load %arg2[%c8, %c0_22, %c0_23] : memref<49x16x128xf32, #tpu.memory_space<vmem>>, vector<1x16x128xf32>
    %47 = vector.shape_cast %46 : vector<1x16x128xf32> to vector<16x128xf32>
    %48 = arith.mulf %45, %47 : vector<16x128xf32>
    %49 = arith.addf %44, %48 : vector<16x128xf32>
    %c8_i32_24 = arith.constant 8 : i32
    %50 = tpu.dynamic_rotate %39 by %c8_i32_24 dim 1 : vector<16x128xf32>, i32 -> vector<16x128xf32>
    %c9 = arith.constant 9 : index
    %c0_25 = arith.constant 0 : index
    %c0_26 = arith.constant 0 : index
    %51 = vector.load %arg2[%c9, %c0_25, %c0_26] : memref<49x16x128xf32, #tpu.memory_space<vmem>>, vector<1x16x128xf32>
    %52 = vector.shape_cast %51 : vector<1x16x128xf32> to vector<16x128xf32>
    %53 = arith.mulf %50, %52 : vector<16x128xf32>
    %54 = arith.addf %49, %53 : vector<16x128xf32>
    %c10 = arith.constant 10 : index
    %c0_27 = arith.constant 0 : index
    %c0_28 = arith.constant 0 : index
    %55 = vector.load %arg2[%c10, %c0_27, %c0_28] : memref<49x16x128xf32, #tpu.memory_space<vmem>>, vector<1x16x128xf32>
    %56 = vector.shape_cast %55 : vector<1x16x128xf32> to vector<16x128xf32>
    %57 = arith.mulf %39, %56 : vector<16x128xf32>
    %58 = arith.addf %54, %57 : vector<16x128xf32>
    %c120_i32_29 = arith.constant 120 : i32
    %59 = tpu.dynamic_rotate %39 by %c120_i32_29 dim 1 : vector<16x128xf32>, i32 -> vector<16x128xf32>
    %c11 = arith.constant 11 : index
    %c0_30 = arith.constant 0 : index
    %c0_31 = arith.constant 0 : index
    %60 = vector.load %arg2[%c11, %c0_30, %c0_31] : memref<49x16x128xf32, #tpu.memory_space<vmem>>, vector<1x16x128xf32>
    %61 = vector.shape_cast %60 : vector<1x16x128xf32> to vector<16x128xf32>
    %62 = arith.mulf %59, %61 : vector<16x128xf32>
    %63 = arith.addf %58, %62 : vector<16x128xf32>
    %c112_i32_32 = arith.constant 112 : i32
    %64 = tpu.dynamic_rotate %39 by %c112_i32_32 dim 1 : vector<16x128xf32>, i32 -> vector<16x128xf32>
    %c12 = arith.constant 12 : index
    %c0_33 = arith.constant 0 : index
    %c0_34 = arith.constant 0 : index
    %65 = vector.load %arg2[%c12, %c0_33, %c0_34] : memref<49x16x128xf32, #tpu.memory_space<vmem>>, vector<1x16x128xf32>
    %66 = vector.shape_cast %65 : vector<1x16x128xf32> to vector<16x128xf32>
    %67 = arith.mulf %64, %66 : vector<16x128xf32>
    %68 = arith.addf %63, %67 : vector<16x128xf32>
    %c104_i32_35 = arith.constant 104 : i32
    %69 = tpu.dynamic_rotate %39 by %c104_i32_35 dim 1 : vector<16x128xf32>, i32 -> vector<16x128xf32>
    %c13 = arith.constant 13 : index
    %c0_36 = arith.constant 0 : index
    %c0_37 = arith.constant 0 : index
    %70 = vector.load %arg2[%c13, %c0_36, %c0_37] : memref<49x16x128xf32, #tpu.memory_space<vmem>>, vector<1x16x128xf32>
    %71 = vector.shape_cast %70 : vector<1x16x128xf32> to vector<16x128xf32>
    %72 = arith.mulf %69, %71 : vector<16x128xf32>
    %73 = arith.addf %68, %72 : vector<16x128xf32>
    %c1_i32 = arith.constant 1 : i32
    %74 = tpu.dynamic_rotate %3 by %c1_i32 dim 0 : vector<16x128xf32>, i32 -> vector<16x128xf32>
    %c24_i32_38 = arith.constant 24 : i32
    %75 = tpu.dynamic_rotate %74 by %c24_i32_38 dim 1 : vector<16x128xf32>, i32 -> vector<16x128xf32>
    %c14 = arith.constant 14 : index
    %c0_39 = arith.constant 0 : index
    %c0_40 = arith.constant 0 : index
    %76 = vector.load %arg2[%c14, %c0_39, %c0_40] : memref<49x16x128xf32, #tpu.memory_space<vmem>>, vector<1x16x128xf32>
    %77 = vector.shape_cast %76 : vector<1x16x128xf32> to vector<16x128xf32>
    %78 = arith.mulf %75, %77 : vector<16x128xf32>
    %79 = arith.addf %73, %78 : vector<16x128xf32>
    %c16_i32_41 = arith.constant 16 : i32
    %80 = tpu.dynamic_rotate %74 by %c16_i32_41 dim 1 : vector<16x128xf32>, i32 -> vector<16x128xf32>
    %c15 = arith.constant 15 : index
    %c0_42 = arith.constant 0 : index
    %c0_43 = arith.constant 0 : index
    %81 = vector.load %arg2[%c15, %c0_42, %c0_43] : memref<49x16x128xf32, #tpu.memory_space<vmem>>, vector<1x16x128xf32>
    %82 = vector.shape_cast %81 : vector<1x16x128xf32> to vector<16x128xf32>
    %83 = arith.mulf %80, %82 : vector<16x128xf32>
    %84 = arith.addf %79, %83 : vector<16x128xf32>
    %c8_i32_44 = arith.constant 8 : i32
    %85 = tpu.dynamic_rotate %74 by %c8_i32_44 dim 1 : vector<16x128xf32>, i32 -> vector<16x128xf32>
    %c16 = arith.constant 16 : index
    %c0_45 = arith.constant 0 : index
    %c0_46 = arith.constant 0 : index
    %86 = vector.load %arg2[%c16, %c0_45, %c0_46] : memref<49x16x128xf32, #tpu.memory_space<vmem>>, vector<1x16x128xf32>
    %87 = vector.shape_cast %86 : vector<1x16x128xf32> to vector<16x128xf32>
    %88 = arith.mulf %85, %87 : vector<16x128xf32>
    %89 = arith.addf %84, %88 : vector<16x128xf32>
    %c17 = arith.constant 17 : index
    %c0_47 = arith.constant 0 : index
    %c0_48 = arith.constant 0 : index
    %90 = vector.load %arg2[%c17, %c0_47, %c0_48] : memref<49x16x128xf32, #tpu.memory_space<vmem>>, vector<1x16x128xf32>
    %91 = vector.shape_cast %90 : vector<1x16x128xf32> to vector<16x128xf32>
    %92 = arith.mulf %74, %91 : vector<16x128xf32>
    %93 = arith.addf %89, %92 : vector<16x128xf32>
    %c120_i32_49 = arith.constant 120 : i32
    %94 = tpu.dynamic_rotate %74 by %c120_i32_49 dim 1 : vector<16x128xf32>, i32 -> vector<16x128xf32>
    %c18 = arith.constant 18 : index
    %c0_50 = arith.constant 0 : index
    %c0_51 = arith.constant 0 : index
    %95 = vector.load %arg2[%c18, %c0_50, %c0_51] : memref<49x16x128xf32, #tpu.memory_space<vmem>>, vector<1x16x128xf32>
    %96 = vector.shape_cast %95 : vector<1x16x128xf32> to vector<16x128xf32>
    %97 = arith.mulf %94, %96 : vector<16x128xf32>
    %98 = arith.addf %93, %97 : vector<16x128xf32>
    %c112_i32_52 = arith.constant 112 : i32
    %99 = tpu.dynamic_rotate %74 by %c112_i32_52 dim 1 : vector<16x128xf32>, i32 -> vector<16x128xf32>
    %c19 = arith.constant 19 : index
    %c0_53 = arith.constant 0 : index
    %c0_54 = arith.constant 0 : index
    %100 = vector.load %arg2[%c19, %c0_53, %c0_54] : memref<49x16x128xf32, #tpu.memory_space<vmem>>, vector<1x16x128xf32>
    %101 = vector.shape_cast %100 : vector<1x16x128xf32> to vector<16x128xf32>
    %102 = arith.mulf %99, %101 : vector<16x128xf32>
    %103 = arith.addf %98, %102 : vector<16x128xf32>
    %c104_i32_55 = arith.constant 104 : i32
    %104 = tpu.dynamic_rotate %74 by %c104_i32_55 dim 1 : vector<16x128xf32>, i32 -> vector<16x128xf32>
    %c20 = arith.constant 20 : index
    %c0_56 = arith.constant 0 : index
    %c0_57 = arith.constant 0 : index
    %105 = vector.load %arg2[%c20, %c0_56, %c0_57] : memref<49x16x128xf32, #tpu.memory_space<vmem>>, vector<1x16x128xf32>
    %106 = vector.shape_cast %105 : vector<1x16x128xf32> to vector<16x128xf32>
    %107 = arith.mulf %104, %106 : vector<16x128xf32>
    %108 = arith.addf %103, %107 : vector<16x128xf32>
    %c24_i32_58 = arith.constant 24 : i32
    %109 = tpu.dynamic_rotate %3 by %c24_i32_58 dim 1 : vector<16x128xf32>, i32 -> vector<16x128xf32>
    %c21 = arith.constant 21 : index
    %c0_59 = arith.constant 0 : index
    %c0_60 = arith.constant 0 : index
    %110 = vector.load %arg2[%c21, %c0_59, %c0_60] : memref<49x16x128xf32, #tpu.memory_space<vmem>>, vector<1x16x128xf32>
    %111 = vector.shape_cast %110 : vector<1x16x128xf32> to vector<16x128xf32>
    %112 = arith.mulf %109, %111 : vector<16x128xf32>
    %113 = arith.addf %108, %112 : vector<16x128xf32>
    %c16_i32_61 = arith.constant 16 : i32
    %114 = tpu.dynamic_rotate %3 by %c16_i32_61 dim 1 : vector<16x128xf32>, i32 -> vector<16x128xf32>
    %c22 = arith.constant 22 : index
    %c0_62 = arith.constant 0 : index
    %c0_63 = arith.constant 0 : index
    %115 = vector.load %arg2[%c22, %c0_62, %c0_63] : memref<49x16x128xf32, #tpu.memory_space<vmem>>, vector<1x16x128xf32>
    %116 = vector.shape_cast %115 : vector<1x16x128xf32> to vector<16x128xf32>
    %117 = arith.mulf %114, %116 : vector<16x128xf32>
    %118 = arith.addf %113, %117 : vector<16x128xf32>
    %c8_i32_64 = arith.constant 8 : i32
    %119 = tpu.dynamic_rotate %3 by %c8_i32_64 dim 1 : vector<16x128xf32>, i32 -> vector<16x128xf32>
    %c23 = arith.constant 23 : index
    %c0_65 = arith.constant 0 : index
    %c0_66 = arith.constant 0 : index
    %120 = vector.load %arg2[%c23, %c0_65, %c0_66] : memref<49x16x128xf32, #tpu.memory_space<vmem>>, vector<1x16x128xf32>
    %121 = vector.shape_cast %120 : vector<1x16x128xf32> to vector<16x128xf32>
    %122 = arith.mulf %119, %121 : vector<16x128xf32>
    %123 = arith.addf %118, %122 : vector<16x128xf32>
    %c24 = arith.constant 24 : index
    %c0_67 = arith.constant 0 : index
    %c0_68 = arith.constant 0 : index
    %124 = vector.load %arg2[%c24, %c0_67, %c0_68] : memref<49x16x128xf32, #tpu.memory_space<vmem>>, vector<1x16x128xf32>
    %125 = vector.shape_cast %124 : vector<1x16x128xf32> to vector<16x128xf32>
    %126 = arith.mulf %3, %125 : vector<16x128xf32>
    %127 = arith.addf %123, %126 : vector<16x128xf32>
    %c120_i32_69 = arith.constant 120 : i32
    %128 = tpu.dynamic_rotate %3 by %c120_i32_69 dim 1 : vector<16x128xf32>, i32 -> vector<16x128xf32>
    %c25 = arith.constant 25 : index
    %c0_70 = arith.constant 0 : index
    %c0_71 = arith.constant 0 : index
    %129 = vector.load %arg2[%c25, %c0_70, %c0_71] : memref<49x16x128xf32, #tpu.memory_space<vmem>>, vector<1x16x128xf32>
    %130 = vector.shape_cast %129 : vector<1x16x128xf32> to vector<16x128xf32>
    %131 = arith.mulf %128, %130 : vector<16x128xf32>
    %132 = arith.addf %127, %131 : vector<16x128xf32>
    %c112_i32_72 = arith.constant 112 : i32
    %133 = tpu.dynamic_rotate %3 by %c112_i32_72 dim 1 : vector<16x128xf32>, i32 -> vector<16x128xf32>
    %c26 = arith.constant 26 : index
    %c0_73 = arith.constant 0 : index
    %c0_74 = arith.constant 0 : index
    %134 = vector.load %arg2[%c26, %c0_73, %c0_74] : memref<49x16x128xf32, #tpu.memory_space<vmem>>, vector<1x16x128xf32>
    %135 = vector.shape_cast %134 : vector<1x16x128xf32> to vector<16x128xf32>
    %136 = arith.mulf %133, %135 : vector<16x128xf32>
    %137 = arith.addf %132, %136 : vector<16x128xf32>
    %c104_i32_75 = arith.constant 104 : i32
    %138 = tpu.dynamic_rotate %3 by %c104_i32_75 dim 1 : vector<16x128xf32>, i32 -> vector<16x128xf32>
    %c27 = arith.constant 27 : index
    %c0_76 = arith.constant 0 : index
    %c0_77 = arith.constant 0 : index
    %139 = vector.load %arg2[%c27, %c0_76, %c0_77] : memref<49x16x128xf32, #tpu.memory_space<vmem>>, vector<1x16x128xf32>
    %140 = vector.shape_cast %139 : vector<1x16x128xf32> to vector<16x128xf32>
    %141 = arith.mulf %138, %140 : vector<16x128xf32>
    %142 = arith.addf %137, %141 : vector<16x128xf32>
    %c15_i32 = arith.constant 15 : i32
    %143 = tpu.dynamic_rotate %3 by %c15_i32 dim 0 : vector<16x128xf32>, i32 -> vector<16x128xf32>
    %c24_i32_78 = arith.constant 24 : i32
    %144 = tpu.dynamic_rotate %143 by %c24_i32_78 dim 1 : vector<16x128xf32>, i32 -> vector<16x128xf32>
    %c28 = arith.constant 28 : index
    %c0_79 = arith.constant 0 : index
    %c0_80 = arith.constant 0 : index
    %145 = vector.load %arg2[%c28, %c0_79, %c0_80] : memref<49x16x128xf32, #tpu.memory_space<vmem>>, vector<1x16x128xf32>
    %146 = vector.shape_cast %145 : vector<1x16x128xf32> to vector<16x128xf32>
    %147 = arith.mulf %144, %146 : vector<16x128xf32>
    %148 = arith.addf %142, %147 : vector<16x128xf32>
    %c16_i32_81 = arith.constant 16 : i32
    %149 = tpu.dynamic_rotate %143 by %c16_i32_81 dim 1 : vector<16x128xf32>, i32 -> vector<16x128xf32>
    %c29 = arith.constant 29 : index
    %c0_82 = arith.constant 0 : index
    %c0_83 = arith.constant 0 : index
    %150 = vector.load %arg2[%c29, %c0_82, %c0_83] : memref<49x16x128xf32, #tpu.memory_space<vmem>>, vector<1x16x128xf32>
    %151 = vector.shape_cast %150 : vector<1x16x128xf32> to vector<16x128xf32>
    %152 = arith.mulf %149, %151 : vector<16x128xf32>
    %153 = arith.addf %148, %152 : vector<16x128xf32>
    %c8_i32_84 = arith.constant 8 : i32
    %154 = tpu.dynamic_rotate %143 by %c8_i32_84 dim 1 : vector<16x128xf32>, i32 -> vector<16x128xf32>
    %c30 = arith.constant 30 : index
    %c0_85 = arith.constant 0 : index
    %c0_86 = arith.constant 0 : index
    %155 = vector.load %arg2[%c30, %c0_85, %c0_86] : memref<49x16x128xf32, #tpu.memory_space<vmem>>, vector<1x16x128xf32>
    %156 = vector.shape_cast %155 : vector<1x16x128xf32> to vector<16x128xf32>
    %157 = arith.mulf %154, %156 : vector<16x128xf32>
    %158 = arith.addf %153, %157 : vector<16x128xf32>
    %c31 = arith.constant 31 : index
    %c0_87 = arith.constant 0 : index
    %c0_88 = arith.constant 0 : index
    %159 = vector.load %arg2[%c31, %c0_87, %c0_88] : memref<49x16x128xf32, #tpu.memory_space<vmem>>, vector<1x16x128xf32>
    %160 = vector.shape_cast %159 : vector<1x16x128xf32> to vector<16x128xf32>
    %161 = arith.mulf %143, %160 : vector<16x128xf32>
    %162 = arith.addf %158, %161 : vector<16x128xf32>
    %c120_i32_89 = arith.constant 120 : i32
    %163 = tpu.dynamic_rotate %143 by %c120_i32_89 dim 1 : vector<16x128xf32>, i32 -> vector<16x128xf32>
    %c32 = arith.constant 32 : index
    %c0_90 = arith.constant 0 : index
    %c0_91 = arith.constant 0 : index
    %164 = vector.load %arg2[%c32, %c0_90, %c0_91] : memref<49x16x128xf32, #tpu.memory_space<vmem>>, vector<1x16x128xf32>
    %165 = vector.shape_cast %164 : vector<1x16x128xf32> to vector<16x128xf32>
    %166 = arith.mulf %163, %165 : vector<16x128xf32>
    %167 = arith.addf %162, %166 : vector<16x128xf32>
    %c112_i32_92 = arith.constant 112 : i32
    %168 = tpu.dynamic_rotate %143 by %c112_i32_92 dim 1 : vector<16x128xf32>, i32 -> vector<16x128xf32>
    %c33 = arith.constant 33 : index
    %c0_93 = arith.constant 0 : index
    %c0_94 = arith.constant 0 : index
    %169 = vector.load %arg2[%c33, %c0_93, %c0_94] : memref<49x16x128xf32, #tpu.memory_space<vmem>>, vector<1x16x128xf32>
    %170 = vector.shape_cast %169 : vector<1x16x128xf32> to vector<16x128xf32>
    %171 = arith.mulf %168, %170 : vector<16x128xf32>
    %172 = arith.addf %167, %171 : vector<16x128xf32>
    %c104_i32_95 = arith.constant 104 : i32
    %173 = tpu.dynamic_rotate %143 by %c104_i32_95 dim 1 : vector<16x128xf32>, i32 -> vector<16x128xf32>
    %c34 = arith.constant 34 : index
    %c0_96 = arith.constant 0 : index
    %c0_97 = arith.constant 0 : index
    %174 = vector.load %arg2[%c34, %c0_96, %c0_97] : memref<49x16x128xf32, #tpu.memory_space<vmem>>, vector<1x16x128xf32>
    %175 = vector.shape_cast %174 : vector<1x16x128xf32> to vector<16x128xf32>
    %176 = arith.mulf %173, %175 : vector<16x128xf32>
    %177 = arith.addf %172, %176 : vector<16x128xf32>
    %c14_i32 = arith.constant 14 : i32
    %178 = tpu.dynamic_rotate %3 by %c14_i32 dim 0 : vector<16x128xf32>, i32 -> vector<16x128xf32>
    %c24_i32_98 = arith.constant 24 : i32
    %179 = tpu.dynamic_rotate %178 by %c24_i32_98 dim 1 : vector<16x128xf32>, i32 -> vector<16x128xf32>
    %c35 = arith.constant 35 : index
    %c0_99 = arith.constant 0 : index
    %c0_100 = arith.constant 0 : index
    %180 = vector.load %arg2[%c35, %c0_99, %c0_100] : memref<49x16x128xf32, #tpu.memory_space<vmem>>, vector<1x16x128xf32>
    %181 = vector.shape_cast %180 : vector<1x16x128xf32> to vector<16x128xf32>
    %182 = arith.mulf %179, %181 : vector<16x128xf32>
    %183 = arith.addf %177, %182 : vector<16x128xf32>
    %c16_i32_101 = arith.constant 16 : i32
    %184 = tpu.dynamic_rotate %178 by %c16_i32_101 dim 1 : vector<16x128xf32>, i32 -> vector<16x128xf32>
    %c36 = arith.constant 36 : index
    %c0_102 = arith.constant 0 : index
    %c0_103 = arith.constant 0 : index
    %185 = vector.load %arg2[%c36, %c0_102, %c0_103] : memref<49x16x128xf32, #tpu.memory_space<vmem>>, vector<1x16x128xf32>
    %186 = vector.shape_cast %185 : vector<1x16x128xf32> to vector<16x128xf32>
    %187 = arith.mulf %184, %186 : vector<16x128xf32>
    %188 = arith.addf %183, %187 : vector<16x128xf32>
    %c8_i32_104 = arith.constant 8 : i32
    %189 = tpu.dynamic_rotate %178 by %c8_i32_104 dim 1 : vector<16x128xf32>, i32 -> vector<16x128xf32>
    %c37 = arith.constant 37 : index
    %c0_105 = arith.constant 0 : index
    %c0_106 = arith.constant 0 : index
    %190 = vector.load %arg2[%c37, %c0_105, %c0_106] : memref<49x16x128xf32, #tpu.memory_space<vmem>>, vector<1x16x128xf32>
    %191 = vector.shape_cast %190 : vector<1x16x128xf32> to vector<16x128xf32>
    %192 = arith.mulf %189, %191 : vector<16x128xf32>
    %193 = arith.addf %188, %192 : vector<16x128xf32>
    %c38 = arith.constant 38 : index
    %c0_107 = arith.constant 0 : index
    %c0_108 = arith.constant 0 : index
    %194 = vector.load %arg2[%c38, %c0_107, %c0_108] : memref<49x16x128xf32, #tpu.memory_space<vmem>>, vector<1x16x128xf32>
    %195 = vector.shape_cast %194 : vector<1x16x128xf32> to vector<16x128xf32>
    %196 = arith.mulf %178, %195 : vector<16x128xf32>
    %197 = arith.addf %193, %196 : vector<16x128xf32>
    %c120_i32_109 = arith.constant 120 : i32
    %198 = tpu.dynamic_rotate %178 by %c120_i32_109 dim 1 : vector<16x128xf32>, i32 -> vector<16x128xf32>
    %c39 = arith.constant 39 : index
    %c0_110 = arith.constant 0 : index
    %c0_111 = arith.constant 0 : index
    %199 = vector.load %arg2[%c39, %c0_110, %c0_111] : memref<49x16x128xf32, #tpu.memory_space<vmem>>, vector<1x16x128xf32>
    %200 = vector.shape_cast %199 : vector<1x16x128xf32> to vector<16x128xf32>
    %201 = arith.mulf %198, %200 : vector<16x128xf32>
    %202 = arith.addf %197, %201 : vector<16x128xf32>
    %c112_i32_112 = arith.constant 112 : i32
    %203 = tpu.dynamic_rotate %178 by %c112_i32_112 dim 1 : vector<16x128xf32>, i32 -> vector<16x128xf32>
    %c40 = arith.constant 40 : index
    %c0_113 = arith.constant 0 : index
    %c0_114 = arith.constant 0 : index
    %204 = vector.load %arg2[%c40, %c0_113, %c0_114] : memref<49x16x128xf32, #tpu.memory_space<vmem>>, vector<1x16x128xf32>
    %205 = vector.shape_cast %204 : vector<1x16x128xf32> to vector<16x128xf32>
    %206 = arith.mulf %203, %205 : vector<16x128xf32>
    %207 = arith.addf %202, %206 : vector<16x128xf32>
    %c104_i32_115 = arith.constant 104 : i32
    %208 = tpu.dynamic_rotate %178 by %c104_i32_115 dim 1 : vector<16x128xf32>, i32 -> vector<16x128xf32>
    %c41 = arith.constant 41 : index
    %c0_116 = arith.constant 0 : index
    %c0_117 = arith.constant 0 : index
    %209 = vector.load %arg2[%c41, %c0_116, %c0_117] : memref<49x16x128xf32, #tpu.memory_space<vmem>>, vector<1x16x128xf32>
    %210 = vector.shape_cast %209 : vector<1x16x128xf32> to vector<16x128xf32>
    %211 = arith.mulf %208, %210 : vector<16x128xf32>
    %212 = arith.addf %207, %211 : vector<16x128xf32>
    %c13_i32 = arith.constant 13 : i32
    %213 = tpu.dynamic_rotate %3 by %c13_i32 dim 0 : vector<16x128xf32>, i32 -> vector<16x128xf32>
    %c24_i32_118 = arith.constant 24 : i32
    %214 = tpu.dynamic_rotate %213 by %c24_i32_118 dim 1 : vector<16x128xf32>, i32 -> vector<16x128xf32>
    %c42 = arith.constant 42 : index
    %c0_119 = arith.constant 0 : index
    %c0_120 = arith.constant 0 : index
    %215 = vector.load %arg2[%c42, %c0_119, %c0_120] : memref<49x16x128xf32, #tpu.memory_space<vmem>>, vector<1x16x128xf32>
    %216 = vector.shape_cast %215 : vector<1x16x128xf32> to vector<16x128xf32>
    %217 = arith.mulf %214, %216 : vector<16x128xf32>
    %218 = arith.addf %212, %217 : vector<16x128xf32>
    %c16_i32_121 = arith.constant 16 : i32
    %219 = tpu.dynamic_rotate %213 by %c16_i32_121 dim 1 : vector<16x128xf32>, i32 -> vector<16x128xf32>
    %c43 = arith.constant 43 : index
    %c0_122 = arith.constant 0 : index
    %c0_123 = arith.constant 0 : index
    %220 = vector.load %arg2[%c43, %c0_122, %c0_123] : memref<49x16x128xf32, #tpu.memory_space<vmem>>, vector<1x16x128xf32>
    %221 = vector.shape_cast %220 : vector<1x16x128xf32> to vector<16x128xf32>
    %222 = arith.mulf %219, %221 : vector<16x128xf32>
    %223 = arith.addf %218, %222 : vector<16x128xf32>
    %c8_i32_124 = arith.constant 8 : i32
    %224 = tpu.dynamic_rotate %213 by %c8_i32_124 dim 1 : vector<16x128xf32>, i32 -> vector<16x128xf32>
    %c44 = arith.constant 44 : index
    %c0_125 = arith.constant 0 : index
    %c0_126 = arith.constant 0 : index
    %225 = vector.load %arg2[%c44, %c0_125, %c0_126] : memref<49x16x128xf32, #tpu.memory_space<vmem>>, vector<1x16x128xf32>
    %226 = vector.shape_cast %225 : vector<1x16x128xf32> to vector<16x128xf32>
    %227 = arith.mulf %224, %226 : vector<16x128xf32>
    %228 = arith.addf %223, %227 : vector<16x128xf32>
    %c45 = arith.constant 45 : index
    %c0_127 = arith.constant 0 : index
    %c0_128 = arith.constant 0 : index
    %229 = vector.load %arg2[%c45, %c0_127, %c0_128] : memref<49x16x128xf32, #tpu.memory_space<vmem>>, vector<1x16x128xf32>
    %230 = vector.shape_cast %229 : vector<1x16x128xf32> to vector<16x128xf32>
    %231 = arith.mulf %213, %230 : vector<16x128xf32>
    %232 = arith.addf %228, %231 : vector<16x128xf32>
    %c120_i32_129 = arith.constant 120 : i32
    %233 = tpu.dynamic_rotate %213 by %c120_i32_129 dim 1 : vector<16x128xf32>, i32 -> vector<16x128xf32>
    %c46 = arith.constant 46 : index
    %c0_130 = arith.constant 0 : index
    %c0_131 = arith.constant 0 : index
    %234 = vector.load %arg2[%c46, %c0_130, %c0_131] : memref<49x16x128xf32, #tpu.memory_space<vmem>>, vector<1x16x128xf32>
    %235 = vector.shape_cast %234 : vector<1x16x128xf32> to vector<16x128xf32>
    %236 = arith.mulf %233, %235 : vector<16x128xf32>
    %237 = arith.addf %232, %236 : vector<16x128xf32>
    %c112_i32_132 = arith.constant 112 : i32
    %238 = tpu.dynamic_rotate %213 by %c112_i32_132 dim 1 : vector<16x128xf32>, i32 -> vector<16x128xf32>
    %c47 = arith.constant 47 : index
    %c0_133 = arith.constant 0 : index
    %c0_134 = arith.constant 0 : index
    %239 = vector.load %arg2[%c47, %c0_133, %c0_134] : memref<49x16x128xf32, #tpu.memory_space<vmem>>, vector<1x16x128xf32>
    %240 = vector.shape_cast %239 : vector<1x16x128xf32> to vector<16x128xf32>
    %241 = arith.mulf %238, %240 : vector<16x128xf32>
    %242 = arith.addf %237, %241 : vector<16x128xf32>
    %c104_i32_135 = arith.constant 104 : i32
    %243 = tpu.dynamic_rotate %213 by %c104_i32_135 dim 1 : vector<16x128xf32>, i32 -> vector<16x128xf32>
    %c48 = arith.constant 48 : index
    %c0_136 = arith.constant 0 : index
    %c0_137 = arith.constant 0 : index
    %244 = vector.load %arg2[%c48, %c0_136, %c0_137] : memref<49x16x128xf32, #tpu.memory_space<vmem>>, vector<1x16x128xf32>
    %245 = vector.shape_cast %244 : vector<1x16x128xf32> to vector<16x128xf32>
    %246 = arith.mulf %243, %245 : vector<16x128xf32>
    %247 = arith.addf %242, %246 : vector<16x128xf32>
    %248 = arith.index_cast %c0_i32 : i32 to index
    %c0_138 = arith.constant 0 : index
    %c0_139 = arith.constant 0 : index
    %249 = vector.load %arg4[%248, %c0_138, %c0_139] : memref<2x16x128xf32, #tpu.memory_space<vmem>>, vector<1x16x128xf32>
    %250 = vector.shape_cast %249 : vector<1x16x128xf32> to vector<16x128xf32>
    %251 = vector.shape_cast %247 : vector<16x128xf32> to vector<1x16x128xf32>
    tpu.vector_store %arg4[%248, %c0_138, %c0_139], %251 {strides = array<i32>} : memref<2x16x128xf32, #tpu.memory_space<vmem>>, vector<1x16x128xf32>,
    %c1_i32_140 = arith.constant 1 : i32
    %252 = arith.index_cast %c1_i32_140 : i32 to index
    %c0_141 = arith.constant 0 : index
    %c0_142 = arith.constant 0 : index
    %253 = vector.load %arg1[%252, %c0_141, %c0_142] : memref<2x16x128xf32, #tpu.memory_space<vmem>>, vector<1x16x128xf32>
    %254 = vector.shape_cast %253 : vector<1x16x128xf32> to vector<16x128xf32>
    %c3_i32_143 = arith.constant 3 : i32
    %255 = tpu.dynamic_rotate %254 by %c3_i32_143 dim 0 : vector<16x128xf32>, i32 -> vector<16x128xf32>
    %c24_i32_144 = arith.constant 24 : i32
    %256 = tpu.dynamic_rotate %255 by %c24_i32_144 dim 1 : vector<16x128xf32>, i32 -> vector<16x128xf32>
    %c0_145 = arith.constant 0 : index
    %c0_146 = arith.constant 0 : index
    %c0_147 = arith.constant 0 : index
    %257 = vector.load %arg2[%c0_145, %c0_146, %c0_147] : memref<49x16x128xf32, #tpu.memory_space<vmem>>, vector<1x16x128xf32>
    %258 = vector.shape_cast %257 : vector<1x16x128xf32> to vector<16x128xf32>
    %259 = arith.mulf %256, %258 : vector<16x128xf32>
    %260 = arith.addf %0, %259 : vector<16x128xf32>
    %c16_i32_148 = arith.constant 16 : i32
    %261 = tpu.dynamic_rotate %255 by %c16_i32_148 dim 1 : vector<16x128xf32>, i32 -> vector<16x128xf32>
    %c1_149 = arith.constant 1 : index
    %c0_150 = arith.constant 0 : index
    %c0_151 = arith.constant 0 : index
    %262 = vector.load %arg2[%c1_149, %c0_150, %c0_151] : memref<49x16x128xf32, #tpu.memory_space<vmem>>, vector<1x16x128xf32>
    %263 = vector.shape_cast %262 : vector<1x16x128xf32> to vector<16x128xf32>
    %264 = arith.mulf %261, %263 : vector<16x128xf32>
    %265 = arith.addf %260, %264 : vector<16x128xf32>
    %c8_i32_152 = arith.constant 8 : i32
    %266 = tpu.dynamic_rotate %255 by %c8_i32_152 dim 1 : vector<16x128xf32>, i32 -> vector<16x128xf32>
    %c2_153 = arith.constant 2 : index
    %c0_154 = arith.constant 0 : index
    %c0_155 = arith.constant 0 : index
    %267 = vector.load %arg2[%c2_153, %c0_154, %c0_155] : memref<49x16x128xf32, #tpu.memory_space<vmem>>, vector<1x16x128xf32>
    %268 = vector.shape_cast %267 : vector<1x16x128xf32> to vector<16x128xf32>
    %269 = arith.mulf %266, %268 : vector<16x128xf32>
    %270 = arith.addf %265, %269 : vector<16x128xf32>
    %c3_156 = arith.constant 3 : index
    %c0_157 = arith.constant 0 : index
    %c0_158 = arith.constant 0 : index
    %271 = vector.load %arg2[%c3_156, %c0_157, %c0_158] : memref<49x16x128xf32, #tpu.memory_space<vmem>>, vector<1x16x128xf32>
    %272 = vector.shape_cast %271 : vector<1x16x128xf32> to vector<16x128xf32>
    %273 = arith.mulf %255, %272 : vector<16x128xf32>
    %274 = arith.addf %270, %273 : vector<16x128xf32>
    %c120_i32_159 = arith.constant 120 : i32
    %275 = tpu.dynamic_rotate %255 by %c120_i32_159 dim 1 : vector<16x128xf32>, i32 -> vector<16x128xf32>
    %c4_160 = arith.constant 4 : index
    %c0_161 = arith.constant 0 : index
    %c0_162 = arith.constant 0 : index
    %276 = vector.load %arg2[%c4_160, %c0_161, %c0_162] : memref<49x16x128xf32, #tpu.memory_space<vmem>>, vector<1x16x128xf32>
    %277 = vector.shape_cast %276 : vector<1x16x128xf32> to vector<16x128xf32>
    %278 = arith.mulf %275, %277 : vector<16x128xf32>
    %279 = arith.addf %274, %278 : vector<16x128xf32>
    %c112_i32_163 = arith.constant 112 : i32
    %280 = tpu.dynamic_rotate %255 by %c112_i32_163 dim 1 : vector<16x128xf32>, i32 -> vector<16x128xf32>
    %c5_164 = arith.constant 5 : index
    %c0_165 = arith.constant 0 : index
    %c0_166 = arith.constant 0 : index
    %281 = vector.load %arg2[%c5_164, %c0_165, %c0_166] : memref<49x16x128xf32, #tpu.memory_space<vmem>>, vector<1x16x128xf32>
    %282 = vector.shape_cast %281 : vector<1x16x128xf32> to vector<16x128xf32>
    %283 = arith.mulf %280, %282 : vector<16x128xf32>
    %284 = arith.addf %279, %283 : vector<16x128xf32>
    %c104_i32_167 = arith.constant 104 : i32
    %285 = tpu.dynamic_rotate %255 by %c104_i32_167 dim 1 : vector<16x128xf32>, i32 -> vector<16x128xf32>
    %c6_168 = arith.constant 6 : index
    %c0_169 = arith.constant 0 : index
    %c0_170 = arith.constant 0 : index
    %286 = vector.load %arg2[%c6_168, %c0_169, %c0_170] : memref<49x16x128xf32, #tpu.memory_space<vmem>>, vector<1x16x128xf32>
    %287 = vector.shape_cast %286 : vector<1x16x128xf32> to vector<16x128xf32>
    %288 = arith.mulf %285, %287 : vector<16x128xf32>
    %289 = arith.addf %284, %288 : vector<16x128xf32>
    %c2_i32_171 = arith.constant 2 : i32
    %290 = tpu.dynamic_rotate %254 by %c2_i32_171 dim 0 : vector<16x128xf32>, i32 -> vector<16x128xf32>
    %c24_i32_172 = arith.constant 24 : i32
    %291 = tpu.dynamic_rotate %290 by %c24_i32_172 dim 1 : vector<16x128xf32>, i32 -> vector<16x128xf32>
    %c7_173 = arith.constant 7 : index
    %c0_174 = arith.constant 0 : index
    %c0_175 = arith.constant 0 : index
    %292 = vector.load %arg2[%c7_173, %c0_174, %c0_175] : memref<49x16x128xf32, #tpu.memory_space<vmem>>, vector<1x16x128xf32>
    %293 = vector.shape_cast %292 : vector<1x16x128xf32> to vector<16x128xf32>
    %294 = arith.mulf %291, %293 : vector<16x128xf32>
    %295 = arith.addf %289, %294 : vector<16x128xf32>
    %c16_i32_176 = arith.constant 16 : i32
    %296 = tpu.dynamic_rotate %290 by %c16_i32_176 dim 1 : vector<16x128xf32>, i32 -> vector<16x128xf32>
    %c8_177 = arith.constant 8 : index
    %c0_178 = arith.constant 0 : index
    %c0_179 = arith.constant 0 : index
    %297 = vector.load %arg2[%c8_177, %c0_178, %c0_179] : memref<49x16x128xf32, #tpu.memory_space<vmem>>, vector<1x16x128xf32>
    %298 = vector.shape_cast %297 : vector<1x16x128xf32> to vector<16x128xf32>
    %299 = arith.mulf %296, %298 : vector<16x128xf32>
    %300 = arith.addf %295, %299 : vector<16x128xf32>
    %c8_i32_180 = arith.constant 8 : i32
    %301 = tpu.dynamic_rotate %290 by %c8_i32_180 dim 1 : vector<16x128xf32>, i32 -> vector<16x128xf32>
    %c9_181 = arith.constant 9 : index
    %c0_182 = arith.constant 0 : index
    %c0_183 = arith.constant 0 : index
    %302 = vector.load %arg2[%c9_181, %c0_182, %c0_183] : memref<49x16x128xf32, #tpu.memory_space<vmem>>, vector<1x16x128xf32>
    %303 = vector.shape_cast %302 : vector<1x16x128xf32> to vector<16x128xf32>
    %304 = arith.mulf %301, %303 : vector<16x128xf32>
    %305 = arith.addf %300, %304 : vector<16x128xf32>
    %c10_184 = arith.constant 10 : index
    %c0_185 = arith.constant 0 : index
    %c0_186 = arith.constant 0 : index
    %306 = vector.load %arg2[%c10_184, %c0_185, %c0_186] : memref<49x16x128xf32, #tpu.memory_space<vmem>>, vector<1x16x128xf32>
    %307 = vector.shape_cast %306 : vector<1x16x128xf32> to vector<16x128xf32>
    %308 = arith.mulf %290, %307 : vector<16x128xf32>
    %309 = arith.addf %305, %308 : vector<16x128xf32>
    %c120_i32_187 = arith.constant 120 : i32
    %310 = tpu.dynamic_rotate %290 by %c120_i32_187 dim 1 : vector<16x128xf32>, i32 -> vector<16x128xf32>
    %c11_188 = arith.constant 11 : index
    %c0_189 = arith.constant 0 : index
    %c0_190 = arith.constant 0 : index
    %311 = vector.load %arg2[%c11_188, %c0_189, %c0_190] : memref<49x16x128xf32, #tpu.memory_space<vmem>>, vector<1x16x128xf32>
    %312 = vector.shape_cast %311 : vector<1x16x128xf32> to vector<16x128xf32>
    %313 = arith.mulf %310, %312 : vector<16x128xf32>
    %314 = arith.addf %309, %313 : vector<16x128xf32>
    %c112_i32_191 = arith.constant 112 : i32
    %315 = tpu.dynamic_rotate %290 by %c112_i32_191 dim 1 : vector<16x128xf32>, i32 -> vector<16x128xf32>
    %c12_192 = arith.constant 12 : index
    %c0_193 = arith.constant 0 : index
    %c0_194 = arith.constant 0 : index
    %316 = vector.load %arg2[%c12_192, %c0_193, %c0_194] : memref<49x16x128xf32, #tpu.memory_space<vmem>>, vector<1x16x128xf32>
    %317 = vector.shape_cast %316 : vector<1x16x128xf32> to vector<16x128xf32>
    %318 = arith.mulf %315, %317 : vector<16x128xf32>
    %319 = arith.addf %314, %318 : vector<16x128xf32>
    %c104_i32_195 = arith.constant 104 : i32
    %320 = tpu.dynamic_rotate %290 by %c104_i32_195 dim 1 : vector<16x128xf32>, i32 -> vector<16x128xf32>
    %c13_196 = arith.constant 13 : index
    %c0_197 = arith.constant 0 : index
    %c0_198 = arith.constant 0 : index
    %321 = vector.load %arg2[%c13_196, %c0_197, %c0_198] : memref<49x16x128xf32, #tpu.memory_space<vmem>>, vector<1x16x128xf32>
    %322 = vector.shape_cast %321 : vector<1x16x128xf32> to vector<16x128xf32>
    %323 = arith.mulf %320, %322 : vector<16x128xf32>
    %324 = arith.addf %319, %323 : vector<16x128xf32>
    %c1_i32_199 = arith.constant 1 : i32
    %325 = tpu.dynamic_rotate %254 by %c1_i32_199 dim 0 : vector<16x128xf32>, i32 -> vector<16x128xf32>
    %c24_i32_200 = arith.constant 24 : i32
    %326 = tpu.dynamic_rotate %325 by %c24_i32_200 dim 1 : vector<16x128xf32>, i32 -> vector<16x128xf32>
    %c14_201 = arith.constant 14 : index
    %c0_202 = arith.constant 0 : index
    %c0_203 = arith.constant 0 : index
    %327 = vector.load %arg2[%c14_201, %c0_202, %c0_203] : memref<49x16x128xf32, #tpu.memory_space<vmem>>, vector<1x16x128xf32>
    %328 = vector.shape_cast %327 : vector<1x16x128xf32> to vector<16x128xf32>
    %329 = arith.mulf %326, %328 : vector<16x128xf32>
    %330 = arith.addf %324, %329 : vector<16x128xf32>
    %c16_i32_204 = arith.constant 16 : i32
    %331 = tpu.dynamic_rotate %325 by %c16_i32_204 dim 1 : vector<16x128xf32>, i32 -> vector<16x128xf32>
    %c15_205 = arith.constant 15 : index
    %c0_206 = arith.constant 0 : index
    %c0_207 = arith.constant 0 : index
    %332 = vector.load %arg2[%c15_205, %c0_206, %c0_207] : memref<49x16x128xf32, #tpu.memory_space<vmem>>, vector<1x16x128xf32>
    %333 = vector.shape_cast %332 : vector<1x16x128xf32> to vector<16x128xf32>
    %334 = arith.mulf %331, %333 : vector<16x128xf32>
    %335 = arith.addf %330, %334 : vector<16x128xf32>
    %c8_i32_208 = arith.constant 8 : i32
    %336 = tpu.dynamic_rotate %325 by %c8_i32_208 dim 1 : vector<16x128xf32>, i32 -> vector<16x128xf32>
    %c16_209 = arith.constant 16 : index
    %c0_210 = arith.constant 0 : index
    %c0_211 = arith.constant 0 : index
    %337 = vector.load %arg2[%c16_209, %c0_210, %c0_211] : memref<49x16x128xf32, #tpu.memory_space<vmem>>, vector<1x16x128xf32>
    %338 = vector.shape_cast %337 : vector<1x16x128xf32> to vector<16x128xf32>
    %339 = arith.mulf %336, %338 : vector<16x128xf32>
    %340 = arith.addf %335, %339 : vector<16x128xf32>
    %c17_212 = arith.constant 17 : index
    %c0_213 = arith.constant 0 : index
    %c0_214 = arith.constant 0 : index
    %341 = vector.load %arg2[%c17_212, %c0_213, %c0_214] : memref<49x16x128xf32, #tpu.memory_space<vmem>>, vector<1x16x128xf32>
    %342 = vector.shape_cast %341 : vector<1x16x128xf32> to vector<16x128xf32>
    %343 = arith.mulf %325, %342 : vector<16x128xf32>
    %344 = arith.addf %340, %343 : vector<16x128xf32>
    %c120_i32_215 = arith.constant 120 : i32
    %345 = tpu.dynamic_rotate %325 by %c120_i32_215 dim 1 : vector<16x128xf32>, i32 -> vector<16x128xf32>
    %c18_216 = arith.constant 18 : index
    %c0_217 = arith.constant 0 : index
    %c0_218 = arith.constant 0 : index
    %346 = vector.load %arg2[%c18_216, %c0_217, %c0_218] : memref<49x16x128xf32, #tpu.memory_space<vmem>>, vector<1x16x128xf32>
    %347 = vector.shape_cast %346 : vector<1x16x128xf32> to vector<16x128xf32>
    %348 = arith.mulf %345, %347 : vector<16x128xf32>
    %349 = arith.addf %344, %348 : vector<16x128xf32>
    %c112_i32_219 = arith.constant 112 : i32
    %350 = tpu.dynamic_rotate %325 by %c112_i32_219 dim 1 : vector<16x128xf32>, i32 -> vector<16x128xf32>
    %c19_220 = arith.constant 19 : index
    %c0_221 = arith.constant 0 : index
    %c0_222 = arith.constant 0 : index
    %351 = vector.load %arg2[%c19_220, %c0_221, %c0_222] : memref<49x16x128xf32, #tpu.memory_space<vmem>>, vector<1x16x128xf32>
    %352 = vector.shape_cast %351 : vector<1x16x128xf32> to vector<16x128xf32>
    %353 = arith.mulf %350, %352 : vector<16x128xf32>
    %354 = arith.addf %349, %353 : vector<16x128xf32>
    %c104_i32_223 = arith.constant 104 : i32
    %355 = tpu.dynamic_rotate %325 by %c104_i32_223 dim 1 : vector<16x128xf32>, i32 -> vector<16x128xf32>
    %c20_224 = arith.constant 20 : index
    %c0_225 = arith.constant 0 : index
    %c0_226 = arith.constant 0 : index
    %356 = vector.load %arg2[%c20_224, %c0_225, %c0_226] : memref<49x16x128xf32, #tpu.memory_space<vmem>>, vector<1x16x128xf32>
    %357 = vector.shape_cast %356 : vector<1x16x128xf32> to vector<16x128xf32>
    %358 = arith.mulf %355, %357 : vector<16x128xf32>
    %359 = arith.addf %354, %358 : vector<16x128xf32>
    %c24_i32_227 = arith.constant 24 : i32
    %360 = tpu.dynamic_rotate %254 by %c24_i32_227 dim 1 : vector<16x128xf32>, i32 -> vector<16x128xf32>
    %c21_228 = arith.constant 21 : index
    %c0_229 = arith.constant 0 : index
    %c0_230 = arith.constant 0 : index
    %361 = vector.load %arg2[%c21_228, %c0_229, %c0_230] : memref<49x16x128xf32, #tpu.memory_space<vmem>>, vector<1x16x128xf32>
    %362 = vector.shape_cast %361 : vector<1x16x128xf32> to vector<16x128xf32>
    %363 = arith.mulf %360, %362 : vector<16x128xf32>
    %364 = arith.addf %359, %363 : vector<16x128xf32>
    %c16_i32_231 = arith.constant 16 : i32
    %365 = tpu.dynamic_rotate %254 by %c16_i32_231 dim 1 : vector<16x128xf32>, i32 -> vector<16x128xf32>
    %c22_232 = arith.constant 22 : index
    %c0_233 = arith.constant 0 : index
    %c0_234 = arith.constant 0 : index
    %366 = vector.load %arg2[%c22_232, %c0_233, %c0_234] : memref<49x16x128xf32, #tpu.memory_space<vmem>>, vector<1x16x128xf32>
    %367 = vector.shape_cast %366 : vector<1x16x128xf32> to vector<16x128xf32>
    %368 = arith.mulf %365, %367 : vector<16x128xf32>
    %369 = arith.addf %364, %368 : vector<16x128xf32>
    %c8_i32_235 = arith.constant 8 : i32
    %370 = tpu.dynamic_rotate %254 by %c8_i32_235 dim 1 : vector<16x128xf32>, i32 -> vector<16x128xf32>
    %c23_236 = arith.constant 23 : index
    %c0_237 = arith.constant 0 : index
    %c0_238 = arith.constant 0 : index
    %371 = vector.load %arg2[%c23_236, %c0_237, %c0_238] : memref<49x16x128xf32, #tpu.memory_space<vmem>>, vector<1x16x128xf32>
    %372 = vector.shape_cast %371 : vector<1x16x128xf32> to vector<16x128xf32>
    %373 = arith.mulf %370, %372 : vector<16x128xf32>
    %374 = arith.addf %369, %373 : vector<16x128xf32>
    %c24_239 = arith.constant 24 : index
    %c0_240 = arith.constant 0 : index
    %c0_241 = arith.constant 0 : index
    %375 = vector.load %arg2[%c24_239, %c0_240, %c0_241] : memref<49x16x128xf32, #tpu.memory_space<vmem>>, vector<1x16x128xf32>
    %376 = vector.shape_cast %375 : vector<1x16x128xf32> to vector<16x128xf32>
    %377 = arith.mulf %254, %376 : vector<16x128xf32>
    %378 = arith.addf %374, %377 : vector<16x128xf32>
    %c120_i32_242 = arith.constant 120 : i32
    %379 = tpu.dynamic_rotate %254 by %c120_i32_242 dim 1 : vector<16x128xf32>, i32 -> vector<16x128xf32>
    %c25_243 = arith.constant 25 : index
    %c0_244 = arith.constant 0 : index
    %c0_245 = arith.constant 0 : index
    %380 = vector.load %arg2[%c25_243, %c0_244, %c0_245] : memref<49x16x128xf32, #tpu.memory_space<vmem>>, vector<1x16x128xf32>
    %381 = vector.shape_cast %380 : vector<1x16x128xf32> to vector<16x128xf32>
    %382 = arith.mulf %379, %381 : vector<16x128xf32>
    %383 = arith.addf %378, %382 : vector<16x128xf32>
    %c112_i32_246 = arith.constant 112 : i32
    %384 = tpu.dynamic_rotate %254 by %c112_i32_246 dim 1 : vector<16x128xf32>, i32 -> vector<16x128xf32>
    %c26_247 = arith.constant 26 : index
    %c0_248 = arith.constant 0 : index
    %c0_249 = arith.constant 0 : index
    %385 = vector.load %arg2[%c26_247, %c0_248, %c0_249] : memref<49x16x128xf32, #tpu.memory_space<vmem>>, vector<1x16x128xf32>
    %386 = vector.shape_cast %385 : vector<1x16x128xf32> to vector<16x128xf32>
    %387 = arith.mulf %384, %386 : vector<16x128xf32>
    %388 = arith.addf %383, %387 : vector<16x128xf32>
    %c104_i32_250 = arith.constant 104 : i32
    %389 = tpu.dynamic_rotate %254 by %c104_i32_250 dim 1 : vector<16x128xf32>, i32 -> vector<16x128xf32>
    %c27_251 = arith.constant 27 : index
    %c0_252 = arith.constant 0 : index
    %c0_253 = arith.constant 0 : index
    %390 = vector.load %arg2[%c27_251, %c0_252, %c0_253] : memref<49x16x128xf32, #tpu.memory_space<vmem>>, vector<1x16x128xf32>
    %391 = vector.shape_cast %390 : vector<1x16x128xf32> to vector<16x128xf32>
    %392 = arith.mulf %389, %391 : vector<16x128xf32>
    %393 = arith.addf %388, %392 : vector<16x128xf32>
    %c15_i32_254 = arith.constant 15 : i32
    %394 = tpu.dynamic_rotate %254 by %c15_i32_254 dim 0 : vector<16x128xf32>, i32 -> vector<16x128xf32>
    %c24_i32_255 = arith.constant 24 : i32
    %395 = tpu.dynamic_rotate %394 by %c24_i32_255 dim 1 : vector<16x128xf32>, i32 -> vector<16x128xf32>
    %c28_256 = arith.constant 28 : index
    %c0_257 = arith.constant 0 : index
    %c0_258 = arith.constant 0 : index
    %396 = vector.load %arg2[%c28_256, %c0_257, %c0_258] : memref<49x16x128xf32, #tpu.memory_space<vmem>>, vector<1x16x128xf32>
    %397 = vector.shape_cast %396 : vector<1x16x128xf32> to vector<16x128xf32>
    %398 = arith.mulf %395, %397 : vector<16x128xf32>
    %399 = arith.addf %393, %398 : vector<16x128xf32>
    %c16_i32_259 = arith.constant 16 : i32
    %400 = tpu.dynamic_rotate %394 by %c16_i32_259 dim 1 : vector<16x128xf32>, i32 -> vector<16x128xf32>
    %c29_260 = arith.constant 29 : index
    %c0_261 = arith.constant 0 : index
    %c0_262 = arith.constant 0 : index
    %401 = vector.load %arg2[%c29_260, %c0_261, %c0_262] : memref<49x16x128xf32, #tpu.memory_space<vmem>>, vector<1x16x128xf32>
    %402 = vector.shape_cast %401 : vector<1x16x128xf32> to vector<16x128xf32>
    %403 = arith.mulf %400, %402 : vector<16x128xf32>
    %404 = arith.addf %399, %403 : vector<16x128xf32>
    %c8_i32_263 = arith.constant 8 : i32
    %405 = tpu.dynamic_rotate %394 by %c8_i32_263 dim 1 : vector<16x128xf32>, i32 -> vector<16x128xf32>
    %c30_264 = arith.constant 30 : index
    %c0_265 = arith.constant 0 : index
    %c0_266 = arith.constant 0 : index
    %406 = vector.load %arg2[%c30_264, %c0_265, %c0_266] : memref<49x16x128xf32, #tpu.memory_space<vmem>>, vector<1x16x128xf32>
    %407 = vector.shape_cast %406 : vector<1x16x128xf32> to vector<16x128xf32>
    %408 = arith.mulf %405, %407 : vector<16x128xf32>
    %409 = arith.addf %404, %408 : vector<16x128xf32>
    %c31_267 = arith.constant 31 : index
    %c0_268 = arith.constant 0 : index
    %c0_269 = arith.constant 0 : index
    %410 = vector.load %arg2[%c31_267, %c0_268, %c0_269] : memref<49x16x128xf32, #tpu.memory_space<vmem>>, vector<1x16x128xf32>
    %411 = vector.shape_cast %410 : vector<1x16x128xf32> to vector<16x128xf32>
    %412 = arith.mulf %394, %411 : vector<16x128xf32>
    %413 = arith.addf %409, %412 : vector<16x128xf32>
    %c120_i32_270 = arith.constant 120 : i32
    %414 = tpu.dynamic_rotate %394 by %c120_i32_270 dim 1 : vector<16x128xf32>, i32 -> vector<16x128xf32>
    %c32_271 = arith.constant 32 : index
    %c0_272 = arith.constant 0 : index
    %c0_273 = arith.constant 0 : index
    %415 = vector.load %arg2[%c32_271, %c0_272, %c0_273] : memref<49x16x128xf32, #tpu.memory_space<vmem>>, vector<1x16x128xf32>
    %416 = vector.shape_cast %415 : vector<1x16x128xf32> to vector<16x128xf32>
    %417 = arith.mulf %414, %416 : vector<16x128xf32>
    %418 = arith.addf %413, %417 : vector<16x128xf32>
    %c112_i32_274 = arith.constant 112 : i32
    %419 = tpu.dynamic_rotate %394 by %c112_i32_274 dim 1 : vector<16x128xf32>, i32 -> vector<16x128xf32>
    %c33_275 = arith.constant 33 : index
    %c0_276 = arith.constant 0 : index
    %c0_277 = arith.constant 0 : index
    %420 = vector.load %arg2[%c33_275, %c0_276, %c0_277] : memref<49x16x128xf32, #tpu.memory_space<vmem>>, vector<1x16x128xf32>
    %421 = vector.shape_cast %420 : vector<1x16x128xf32> to vector<16x128xf32>
    %422 = arith.mulf %419, %421 : vector<16x128xf32>
    %423 = arith.addf %418, %422 : vector<16x128xf32>
    %c104_i32_278 = arith.constant 104 : i32
    %424 = tpu.dynamic_rotate %394 by %c104_i32_278 dim 1 : vector<16x128xf32>, i32 -> vector<16x128xf32>
    %c34_279 = arith.constant 34 : index
    %c0_280 = arith.constant 0 : index
    %c0_281 = arith.constant 0 : index
    %425 = vector.load %arg2[%c34_279, %c0_280, %c0_281] : memref<49x16x128xf32, #tpu.memory_space<vmem>>, vector<1x16x128xf32>
    %426 = vector.shape_cast %425 : vector<1x16x128xf32> to vector<16x128xf32>
    %427 = arith.mulf %424, %426 : vector<16x128xf32>
    %428 = arith.addf %423, %427 : vector<16x128xf32>
    %c14_i32_282 = arith.constant 14 : i32
    %429 = tpu.dynamic_rotate %254 by %c14_i32_282 dim 0 : vector<16x128xf32>, i32 -> vector<16x128xf32>
    %c24_i32_283 = arith.constant 24 : i32
    %430 = tpu.dynamic_rotate %429 by %c24_i32_283 dim 1 : vector<16x128xf32>, i32 -> vector<16x128xf32>
    %c35_284 = arith.constant 35 : index
    %c0_285 = arith.constant 0 : index
    %c0_286 = arith.constant 0 : index
    %431 = vector.load %arg2[%c35_284, %c0_285, %c0_286] : memref<49x16x128xf32, #tpu.memory_space<vmem>>, vector<1x16x128xf32>
    %432 = vector.shape_cast %431 : vector<1x16x128xf32> to vector<16x128xf32>
    %433 = arith.mulf %430, %432 : vector<16x128xf32>
    %434 = arith.addf %428, %433 : vector<16x128xf32>
    %c16_i32_287 = arith.constant 16 : i32
    %435 = tpu.dynamic_rotate %429 by %c16_i32_287 dim 1 : vector<16x128xf32>, i32 -> vector<16x128xf32>
    %c36_288 = arith.constant 36 : index
    %c0_289 = arith.constant 0 : index
    %c0_290 = arith.constant 0 : index
    %436 = vector.load %arg2[%c36_288, %c0_289, %c0_290] : memref<49x16x128xf32, #tpu.memory_space<vmem>>, vector<1x16x128xf32>
    %437 = vector.shape_cast %436 : vector<1x16x128xf32> to vector<16x128xf32>
    %438 = arith.mulf %435, %437 : vector<16x128xf32>
    %439 = arith.addf %434, %438 : vector<16x128xf32>
    %c8_i32_291 = arith.constant 8 : i32
    %440 = tpu.dynamic_rotate %429 by %c8_i32_291 dim 1 : vector<16x128xf32>, i32 -> vector<16x128xf32>
    %c37_292 = arith.constant 37 : index
    %c0_293 = arith.constant 0 : index
    %c0_294 = arith.constant 0 : index
    %441 = vector.load %arg2[%c37_292, %c0_293, %c0_294] : memref<49x16x128xf32, #tpu.memory_space<vmem>>, vector<1x16x128xf32>
    %442 = vector.shape_cast %441 : vector<1x16x128xf32> to vector<16x128xf32>
    %443 = arith.mulf %440, %442 : vector<16x128xf32>
    %444 = arith.addf %439, %443 : vector<16x128xf32>
    %c38_295 = arith.constant 38 : index
    %c0_296 = arith.constant 0 : index
    %c0_297 = arith.constant 0 : index
    %445 = vector.load %arg2[%c38_295, %c0_296, %c0_297] : memref<49x16x128xf32, #tpu.memory_space<vmem>>, vector<1x16x128xf32>
    %446 = vector.shape_cast %445 : vector<1x16x128xf32> to vector<16x128xf32>
    %447 = arith.mulf %429, %446 : vector<16x128xf32>
    %448 = arith.addf %444, %447 : vector<16x128xf32>
    %c120_i32_298 = arith.constant 120 : i32
    %449 = tpu.dynamic_rotate %429 by %c120_i32_298 dim 1 : vector<16x128xf32>, i32 -> vector<16x128xf32>
    %c39_299 = arith.constant 39 : index
    %c0_300 = arith.constant 0 : index
    %c0_301 = arith.constant 0 : index
    %450 = vector.load %arg2[%c39_299, %c0_300, %c0_301] : memref<49x16x128xf32, #tpu.memory_space<vmem>>, vector<1x16x128xf32>
    %451 = vector.shape_cast %450 : vector<1x16x128xf32> to vector<16x128xf32>
    %452 = arith.mulf %449, %451 : vector<16x128xf32>
    %453 = arith.addf %448, %452 : vector<16x128xf32>
    %c112_i32_302 = arith.constant 112 : i32
    %454 = tpu.dynamic_rotate %429 by %c112_i32_302 dim 1 : vector<16x128xf32>, i32 -> vector<16x128xf32>
    %c40_303 = arith.constant 40 : index
    %c0_304 = arith.constant 0 : index
    %c0_305 = arith.constant 0 : index
    %455 = vector.load %arg2[%c40_303, %c0_304, %c0_305] : memref<49x16x128xf32, #tpu.memory_space<vmem>>, vector<1x16x128xf32>
    %456 = vector.shape_cast %455 : vector<1x16x128xf32> to vector<16x128xf32>
    %457 = arith.mulf %454, %456 : vector<16x128xf32>
    %458 = arith.addf %453, %457 : vector<16x128xf32>
    %c104_i32_306 = arith.constant 104 : i32
    %459 = tpu.dynamic_rotate %429 by %c104_i32_306 dim 1 : vector<16x128xf32>, i32 -> vector<16x128xf32>
    %c41_307 = arith.constant 41 : index
    %c0_308 = arith.constant 0 : index
    %c0_309 = arith.constant 0 : index
    %460 = vector.load %arg2[%c41_307, %c0_308, %c0_309] : memref<49x16x128xf32, #tpu.memory_space<vmem>>, vector<1x16x128xf32>
    %461 = vector.shape_cast %460 : vector<1x16x128xf32> to vector<16x128xf32>
    %462 = arith.mulf %459, %461 : vector<16x128xf32>
    %463 = arith.addf %458, %462 : vector<16x128xf32>
    %c13_i32_310 = arith.constant 13 : i32
    %464 = tpu.dynamic_rotate %254 by %c13_i32_310 dim 0 : vector<16x128xf32>, i32 -> vector<16x128xf32>
    %c24_i32_311 = arith.constant 24 : i32
    %465 = tpu.dynamic_rotate %464 by %c24_i32_311 dim 1 : vector<16x128xf32>, i32 -> vector<16x128xf32>
    %c42_312 = arith.constant 42 : index
    %c0_313 = arith.constant 0 : index
    %c0_314 = arith.constant 0 : index
    %466 = vector.load %arg2[%c42_312, %c0_313, %c0_314] : memref<49x16x128xf32, #tpu.memory_space<vmem>>, vector<1x16x128xf32>
    %467 = vector.shape_cast %466 : vector<1x16x128xf32> to vector<16x128xf32>
    %468 = arith.mulf %465, %467 : vector<16x128xf32>
    %469 = arith.addf %463, %468 : vector<16x128xf32>
    %c16_i32_315 = arith.constant 16 : i32
    %470 = tpu.dynamic_rotate %464 by %c16_i32_315 dim 1 : vector<16x128xf32>, i32 -> vector<16x128xf32>
    %c43_316 = arith.constant 43 : index
    %c0_317 = arith.constant 0 : index
    %c0_318 = arith.constant 0 : index
    %471 = vector.load %arg2[%c43_316, %c0_317, %c0_318] : memref<49x16x128xf32, #tpu.memory_space<vmem>>, vector<1x16x128xf32>
    %472 = vector.shape_cast %471 : vector<1x16x128xf32> to vector<16x128xf32>
    %473 = arith.mulf %470, %472 : vector<16x128xf32>
    %474 = arith.addf %469, %473 : vector<16x128xf32>
    %c8_i32_319 = arith.constant 8 : i32
    %475 = tpu.dynamic_rotate %464 by %c8_i32_319 dim 1 : vector<16x128xf32>, i32 -> vector<16x128xf32>
    %c44_320 = arith.constant 44 : index
    %c0_321 = arith.constant 0 : index
    %c0_322 = arith.constant 0 : index
    %476 = vector.load %arg2[%c44_320, %c0_321, %c0_322] : memref<49x16x128xf32, #tpu.memory_space<vmem>>, vector<1x16x128xf32>
    %477 = vector.shape_cast %476 : vector<1x16x128xf32> to vector<16x128xf32>
    %478 = arith.mulf %475, %477 : vector<16x128xf32>
    %479 = arith.addf %474, %478 : vector<16x128xf32>
    %c45_323 = arith.constant 45 : index
    %c0_324 = arith.constant 0 : index
    %c0_325 = arith.constant 0 : index
    %480 = vector.load %arg2[%c45_323, %c0_324, %c0_325] : memref<49x16x128xf32, #tpu.memory_space<vmem>>, vector<1x16x128xf32>
    %481 = vector.shape_cast %480 : vector<1x16x128xf32> to vector<16x128xf32>
    %482 = arith.mulf %464, %481 : vector<16x128xf32>
    %483 = arith.addf %479, %482 : vector<16x128xf32>
    %c120_i32_326 = arith.constant 120 : i32
    %484 = tpu.dynamic_rotate %464 by %c120_i32_326 dim 1 : vector<16x128xf32>, i32 -> vector<16x128xf32>
    %c46_327 = arith.constant 46 : index
    %c0_328 = arith.constant 0 : index
    %c0_329 = arith.constant 0 : index
    %485 = vector.load %arg2[%c46_327, %c0_328, %c0_329] : memref<49x16x128xf32, #tpu.memory_space<vmem>>, vector<1x16x128xf32>
    %486 = vector.shape_cast %485 : vector<1x16x128xf32> to vector<16x128xf32>
    %487 = arith.mulf %484, %486 : vector<16x128xf32>
    %488 = arith.addf %483, %487 : vector<16x128xf32>
    %c112_i32_330 = arith.constant 112 : i32
    %489 = tpu.dynamic_rotate %464 by %c112_i32_330 dim 1 : vector<16x128xf32>, i32 -> vector<16x128xf32>
    %c47_331 = arith.constant 47 : index
    %c0_332 = arith.constant 0 : index
    %c0_333 = arith.constant 0 : index
    %490 = vector.load %arg2[%c47_331, %c0_332, %c0_333] : memref<49x16x128xf32, #tpu.memory_space<vmem>>, vector<1x16x128xf32>
    %491 = vector.shape_cast %490 : vector<1x16x128xf32> to vector<16x128xf32>
    %492 = arith.mulf %489, %491 : vector<16x128xf32>
    %493 = arith.addf %488, %492 : vector<16x128xf32>
    %c104_i32_334 = arith.constant 104 : i32
    %494 = tpu.dynamic_rotate %464 by %c104_i32_334 dim 1 : vector<16x128xf32>, i32 -> vector<16x128xf32>
    %c48_335 = arith.constant 48 : index
    %c0_336 = arith.constant 0 : index
    %c0_337 = arith.constant 0 : index
    %495 = vector.load %arg2[%c48_335, %c0_336, %c0_337] : memref<49x16x128xf32, #tpu.memory_space<vmem>>, vector<1x16x128xf32>
    %496 = vector.shape_cast %495 : vector<1x16x128xf32> to vector<16x128xf32>
    %497 = arith.mulf %494, %496 : vector<16x128xf32>
    %498 = arith.addf %493, %497 : vector<16x128xf32>
    %499 = arith.index_cast %c1_i32_140 : i32 to index
    %c0_338 = arith.constant 0 : index
    %c0_339 = arith.constant 0 : index
    %500 = vector.load %arg4[%499, %c0_338, %c0_339] : memref<2x16x128xf32, #tpu.memory_space<vmem>>, vector<1x16x128xf32>
    %501 = vector.shape_cast %500 : vector<1x16x128xf32> to vector<16x128xf32>
    %502 = vector.shape_cast %498 : vector<16x128xf32> to vector<1x16x128xf32>
    tpu.vector_store %arg4[%499, %c0_338, %c0_339], %502 {strides = array<i32>} : memref<2x16x128xf32, #tpu.memory_space<vmem>>, vector<1x16x128xf32>,
    %c2_i32_340 = arith.constant 2 : i32
    return
  }
  func.func @transform_0(%arg0: i32) -> (i32, i32, i32) {
    %c0_i32 = arith.constant 0 : i32
    %c0_i32_0 = arith.constant 0 : i32
    %c0_i32_1 = arith.constant 0 : i32
    return %arg0, %c0_i32, %c0_i32_0 : i32, i32, i32
  }
  func.func @transform_1(%arg0: i32) -> (i32, i32, i32) {
    %c0_i32 = arith.constant 0 : i32
    %c0_i32_0 = arith.constant 0 : i32
    %c0_i32_1 = arith.constant 0 : i32
    %c0_i32_2 = arith.constant 0 : i32
    return %c0_i32, %c0_i32_0, %c0_i32_1 : i32, i32, i32
  }
  func.func @transform_2(%arg0: i32) -> (i32, i32) {
    %c0_i32 = arith.constant 0 : i32
    %c0_i32_0 = arith.constant 0 : i32
    %c0_i32_1 = arith.constant 0 : i32
    return %c0_i32, %c0_i32_0 : i32, i32
  }
  func.func @transform_3(%arg0: i32) -> (i32, i32, i32) {
    %c0_i32 = arith.constant 0 : i32
    %c0_i32_0 = arith.constant 0 : i32
    %c0_i32_1 = arith.constant 0 : i32
    return %arg0, %c0_i32, %c0_i32_0 : i32, i32, i32
  }
}

</mosaic_0001>

<bundles_post_ra>
// kernel: msdwconv_nhwc.1
= control target key start
LH: loop header
LB: loop body
LE: loop exit
PB: predicated region body
PF: predicated region fallthrough
CT: control target
= control target key end

     0   :  { %v20_v0 = vlaneseq  ;;  %s1262_s16 = smov 16   ;;  %s1263_s17 = smov 24   ;;  %s2516_s0 = inlined_call_operand.vmem [shape: f32[2,16,128], index: 0, kind: input, shape index: {}]   ;;  %s2517_s1 = inlined_call_operand.vmem [shape: f32[49,16,128], index: 1, kind: input, shape index: {}]   ;;  %s2518_s2 = inlined_call_operand.vmem [shape: f32[16,128], index: 2, kind: input, shape index: {}]   ;;  %s2519_s3 = inlined_call_operand.vmem [shape: f32[2,16,128], index: 3, kind: output, shape index: {}]  }
   0x1   :  { %v1291_v1 = vld [vmem:[%s2516_s0] sm:$0xff]  ;;  %v1296_v2 = vld [vmem:[%s2516_s0 + $0x8] sm:$0xff]  ;;  %s1264_s18 = smov 8   ;;  %s1265_s19 = smov 120   ;;  %v1504_v34 = vld [vmem:[%s2517_s1 + $0x18] sm:$0xff] }
   0x2   :  { %v18_v3 = vrot.slane %v1291_v1, 5  ;;  %v19_v4 = vrot.slane %v1296_v2, 5  ;;  %v1300_v5 = vshrl.u32 %v20_v0, 7  ;;  %s1266_s20 = smov 112   ;;  %v97_v8 = vrot.slane %v1291_v1, 6  ;;  %s1267_s21 = smov 104  }
   0x3   :  { %v98_v9 = vrot.slane %v1296_v2, 6  ;;  %v175_v12 = vrot.slane %v1291_v1, 7  ;;  %v176_v13 = vrot.slane %v1296_v2, 7  ;;  %v326_v16 = vrot.slane %v1291_v1, 1  ;;  %v1470_v24 = vld [vmem:[%s2517_s1 + $0x8] sm:$0xff]  ;;  %v1483_v27 = vld [vmem:[%s2517_s1] sm:$0xff] }
   0x4   :  { %vm22_vm0 = vcmp.lt.s32.totalorder %v1300_v5, 3  ;;  %vm99_vm1 = vcmp.lt.s32.totalorder %v1300_v5, 2  ;;  %vm177_vm2 = vcmp.lt.s32.totalorder %v1300_v5, 1  ;;  %v327_v17 = vrot.slane %v1296_v2, 1  ;;  %v1489_v31 = vld [vmem:[%s2518_s2 + $0x8] sm:$0xff]  ;;  %v1499_v33 = vld [vmem:[%s2518_s2] sm:$0xff] }
   0x5   :  { %v1305_v6 = vsel %vm22_vm0, %v19_v4, %v18_v3  ;;  %v1313_v7 = vsel %vm22_vm0, %v18_v3, %v19_v4  ;;  %v1340_v10 = vsel %vm99_vm1, %v97_v8, %v98_v9  ;;  %v1344_v11 = vsel %vm99_vm1, %v98_v9, %v97_v8  ;;  %v1509_v37 = vld [vmem:[%s2517_s1 + $0x10] sm:$0xff]  ;;  %v1515_v39 = vld [vmem:[%s2517_s1 + $0x28] sm:$0xff]  ;;  %v1520_v40 = vld [vmem:[%s2517_s1 + $0x20] sm:$0xff] }
   0x6   :  { %35 = vrot.lane.b32.xlu1 %v1305_v6, %s1262_s16  ;;  %25 = vrot.lane.b32.xlu0 %v1305_v6, %s1263_s17  ;;  %v1375_v14 = vsel %vm177_vm2, %v175_v12, %v176_v13  ;;  %v1379_v15 = vsel %vm177_vm2, %v176_v13, %v175_v12  ;;  %vm328_vm3 = vcmp.lt.s32.totalorder %v1300_v5, 7  ;;  %v404_v20 = vrot.slane %v1291_v1, 2  ;;  %v1534_v49 = vld [vmem:[%s2517_s1 + $0x38] sm:$0xff]  ;;  %v1539_v50 = vld [vmem:[%s2517_s1 + $0x30] sm:$0xff] }
   0x7   :  { %v1434_v18 = vsel %vm328_vm3, %v327_v17, %v326_v16  ;;  %v1438_v19 = vsel %vm328_vm3, %v326_v16, %v327_v17  ;;  %v405_v21 = vrot.slane %v1296_v2, 2  ;;  %vm406_vm4 = vcmp.lt.s32.totalorder %v1300_v5, 6  ;;  %v1552_v58 = vld [vmem:[%s2517_s1 + $0x48] sm:$0xff]  ;;  %v1557_v59 = vld [vmem:[%s2517_s1 + $0x40] sm:$0xff]  ;;  %v1566_v60 = vld [vmem:[%s2517_s1 + $0x58] sm:$0xff] }
   0x8   :  { %v61_v55 = vmul.f32 %v1534_v49, %v1313_v7  ;;  %v60_v56 = vmul.f32 %v1539_v50, %v1305_v6  ;;  %v1571_v61 = vld [vmem:[%s2517_s1 + $0x50] sm:$0xff]  ;;  %v1583_v8 = vld [vmem:[%s2517_s1 + $0x60] sm:$0xff]  ;;  %v482_v9 = vrot.slane %v1291_v1, 3  ;;  %v483_v12 = vrot.slane %v1296_v2, 3  ;;  %v1597_v17 = vld [vmem:[%s2517_s1 + $0x78] sm:$0xff] }
   0x9   :  { %v1474_v25 = vsel %vm406_vm4, %v405_v21, %v404_v20  ;;  %v1478_v26 = vsel %vm406_vm4, %v404_v20, %v405_v21  ;;  %vm484_vm5 = vcmp.lt.s32.totalorder %v1300_v5, 5  ;;  %v1602_v21 = vld [vmem:[%s2517_s1 + $0x70] sm:$0xff] }
   0xa   :  { %37 = vrot.lane.b32.xlu1 %v1313_v7, %s1262_s16  ;;  %27 = vrot.lane.b32.xlu0 %v1313_v7, %s1263_s17 }
   0xe   :  { %48 = vrot.lane.b32.xlu1 %v1313_v7, %s1264_s18  ;;  %46 = vrot.lane.b32.xlu0 %v1305_v6, %s1264_s18 }
  0x12   :  { %66 = vrot.lane.b32.xlu1 %v1313_v7, %s1265_s19  ;;  %64 = vrot.lane.b32.xlu0 %v1305_v6, %s1265_s19 }
  0x16   :  { %77 = vrot.lane.b32.xlu1 %v1313_v7, %s1266_s20  ;;  %75 = vrot.lane.b32.xlu0 %v1305_v6, %s1266_s20 }
  0x1a   :  { %88 = vrot.lane.b32.xlu1 %v1313_v7, %s1267_s21  ;;  %86 = vrot.lane.b32.xlu0 %v1305_v6, %s1267_s21  ;;  %v1578_v7 = vld [vmem:[%s2517_s1 + $0x68] sm:$0xff] }
  0x1e   :  { %104 = vrot.lane.b32.xlu1 %v1340_v10, %s1263_s17  ;;  %102 = vrot.lane.b32.xlu0 %v1344_v11, %s1263_s17 }
  0x22   :  { %115 = vrot.lane.b32.xlu1 %v1340_v10, %s1262_s16  ;;  %113 = vrot.lane.b32.xlu0 %v1344_v11, %s1262_s16 }
  0x26   :  { %126 = vrot.lane.b32.xlu1 %v1340_v10, %s1264_s18  ;;  %124 = vrot.lane.b32.xlu0 %v1344_v11, %s1264_s18 }
  0x2a   :  { %144 = vrot.lane.b32.xlu1 %v1340_v10, %s1265_s19  ;;  %142 = vrot.lane.b32.xlu0 %v1344_v11, %s1265_s19 }
  0x2e   :  { %155 = vrot.lane.b32.xlu1 %v1340_v10, %s1266_s20  ;;  %153 = vrot.lane.b32.xlu0 %v1344_v11, %s1266_s20 }
  0x32   :  { %166 = vrot.lane.b32.xlu1 %v1340_v10, %s1267_s21  ;;  %164 = vrot.lane.b32.xlu0 %v1344_v11, %s1267_s21 }
  0x36   :  { %182 = vrot.lane.b32.xlu1 %v1375_v14, %s1263_s17  ;;  %180 = vrot.lane.b32.xlu0 %v1379_v15, %s1263_s17 }
  0x3a   :  { %193 = vrot.lane.b32.xlu1 %v1375_v14, %s1262_s16  ;;  %191 = vrot.lane.b32.xlu0 %v1379_v15, %s1262_s16 }
  0x3e   :  { %204 = vrot.lane.b32.xlu1 %v1375_v14, %s1264_s18  ;;  %202 = vrot.lane.b32.xlu0 %v1379_v15, %s1264_s18 }
  0x42   :  { %222 = vrot.lane.b32.xlu1 %v1375_v14, %s1265_s19  ;;  %220 = vrot.lane.b32.xlu0 %v1379_v15, %s1265_s19 }
  0x46   :  { %233 = vrot.lane.b32.xlu1 %v1375_v14, %s1266_s20  ;;  %231 = vrot.lane.b32.xlu0 %v1379_v15, %s1266_s20 }
  0x4a   :  { %244 = vrot.lane.b32.xlu1 %v1375_v14, %s1267_s21  ;;  %242 = vrot.lane.b32.xlu0 %v1379_v15, %s1267_s21 }
  0x4e   :  { %255 = vrot.lane.b32.xlu1 %v1296_v2, %s1263_s17  ;;  %253 = vrot.lane.b32.xlu0 %v1291_v1, %s1263_s17 }
  0x52   :  { %266 = vrot.lane.b32.xlu1 %v1296_v2, %s1262_s16  ;;  %264 = vrot.lane.b32.xlu0 %v1291_v1, %s1262_s16 }
  0x56   :  { %277 = vrot.lane.b32.xlu1 %v1296_v2, %s1264_s18  ;;  %275 = vrot.lane.b32.xlu0 %v1291_v1, %s1264_s18 }
  0x5a   :  { %295 = vrot.lane.b32.xlu1 %v1296_v2, %s1265_s19  ;;  %293 = vrot.lane.b32.xlu0 %v1291_v1, %s1265_s19 }
  0x5e   :  { %306 = vrot.lane.b32.xlu1 %v1296_v2, %s1266_s20  ;;  %304 = vrot.lane.b32.xlu0 %v1291_v1, %s1266_s20 }
  0x62   :  { %317 = vrot.lane.b32.xlu1 %v1296_v2, %s1267_s21  ;;  %315 = vrot.lane.b32.xlu0 %v1291_v1, %s1267_s21 }
  0x66   :  { %333 = vrot.lane.b32.xlu1 %v1434_v18, %s1263_s17  ;;  %331 = vrot.lane.b32.xlu0 %v1438_v19, %s1263_s17 }
  0x6a   :  { %344 = vrot.lane.b32.xlu1 %v1434_v18, %s1262_s16  ;;  %342 = vrot.lane.b32.xlu0 %v1438_v19, %s1262_s16 }
  0x6e   :  { %355 = vrot.lane.b32.xlu1 %v1434_v18, %s1264_s18  ;;  %353 = vrot.lane.b32.xlu0 %v1438_v19, %s1264_s18 }
  0x72   :  { %373 = vrot.lane.b32.xlu1 %v1434_v18, %s1265_s19  ;;  %371 = vrot.lane.b32.xlu0 %v1438_v19, %s1265_s19 }
  0x76   :  { %384 = vrot.lane.b32.xlu1 %v1434_v18, %s1266_s20  ;;  %382 = vrot.lane.b32.xlu0 %v1438_v19, %s1266_s20 }
  0x78   :  { %v36_v22 = vpop.permute.xlu1 %35  ;;  %v26_v23 = vpop.permute.xlu0 %25 }
  0x79   :  { %v31_v32 = vmul.f32 %v1483_v27, %v26_v23  ;;  %v42_v45 = vmul.f32 %v1509_v37, %v36_v22 }
  0x7a   :  { %395 = vrot.lane.b32.xlu1 %v1434_v18, %s1267_s21  ;;  %393 = vrot.lane.b32.xlu0 %v1438_v19, %s1267_s21 }
  0x7b   :  { %v33_v41 = vadd.f32 %v31_v32, %v1499_v33  ;;  %v1613_v32 = vld [vmem:[%s2517_s1 + $0x88] sm:$0xff] }
  0x7c   :  { %v38_v28 = vpop.permute.xlu1 %37  ;;  %v28_v29 = vpop.permute.xlu0 %27 }
  0x7d   :  { %v32_v30 = vmul.f32 %v1470_v24, %v28_v29  ;;  %v43_v42 = vmul.f32 %v1504_v34, %v38_v28  ;;  %v44_v51 = vadd.f32 %v42_v45, %v33_v41 }
  0x7e   :  { %411 = vrot.lane.b32.xlu1 %v1474_v25, %s1263_s17  ;;  %409 = vrot.lane.b32.xlu0 %v1478_v26, %s1263_s17 }
  0x7f   :  { %v34_v38 = vadd.f32 %v32_v30, %v1489_v31 }
  0x80   :  { %v49_v35 = vpop.permute.xlu1 %48  ;;  %v47_v36 = vpop.permute.xlu0 %46 }
  0x81   :  { %v45_v46 = vadd.f32 %v43_v42, %v34_v38  ;;  %v54_v47 = vmul.f32 %v1515_v39, %v49_v35  ;;  %v53_v48 = vmul.f32 %v1520_v40, %v47_v36  ;;  %v1618_v35 = vld [vmem:[%s2517_s1 + $0x80] sm:$0xff]  ;;  %v1622_v36 = vsel %vm484_vm5, %v483_v12, %v482_v9 }
  0x82   :  { %422 = vrot.lane.b32.xlu1 %v1474_v25, %s1262_s16  ;;  %420 = vrot.lane.b32.xlu0 %v1478_v26, %s1262_s16  ;;  %v1626_v38 = vsel %vm484_vm5, %v482_v9, %v483_v12 }
  0x83   :  { %v56_v54 = vadd.f32 %v54_v47, %v45_v46  ;;  %v55_v57 = vadd.f32 %v53_v48, %v44_v51 }
  0x84   :  { %v67_v43 = vpop.permute.xlu1 %66  ;;  %v65_v44 = vpop.permute.xlu0 %64 }
  0x85   :  { %v63_v0 = vadd.f32 %v61_v55, %v56_v54  ;;  %v62_v3 = vadd.f32 %v60_v56, %v55_v57  ;;  %v72_v4 = vmul.f32 %v1552_v58, %v67_v43  ;;  %v71_v6 = vmul.f32 %v1557_v59, %v65_v44  ;;  %v1640_v54 = vld [vmem:[%s2517_s1 + $0xa0] sm:$0xff]  ;;  %v1649_v55 = vld [vmem:[%s2517_s1 + $0x98] sm:$0xff]  ;;  %v1654_v56 = vld [vmem:[%s2517_s1 + $0x90] sm:$0xff] }
  0x86   :  { %433 = vrot.lane.b32.xlu1 %v1474_v25, %s1264_s18  ;;  %431 = vrot.lane.b32.xlu0 %v1478_v26, %s1264_s18  ;;  %2584 = vst [vmem:[#allocation2_spill] sm:$0xff] %v1654_v56 }
  0x87   :  { %v74_v23 = vadd.f32 %v72_v4, %v63_v0  ;;  %v73_v28 = vadd.f32 %v71_v6, %v62_v3  ;;  %v138_v3 = vmul.f32 %v1640_v54, %v1344_v11 }
  0x88   :  { %v78_v52 = vpop.permute.xlu1 %77  ;;  %v76_v53 = vpop.permute.xlu0 %75 }
  0x89   :  { %v83_v13 = vmul.f32 %v1566_v60, %v78_v52  ;;  %v82_v16 = vmul.f32 %v1571_v61, %v76_v53  ;;  %v1635_v53 = vld [vmem:[%s2517_s1 + $0xa8] sm:$0xff] }
  0x8a   :  { %451 = vrot.lane.b32.xlu1 %v1474_v25, %s1265_s19  ;;  %449 = vrot.lane.b32.xlu0 %v1478_v26, %s1265_s19 }
  0x8b   :  { %v85_v41 = vadd.f32 %v83_v13, %v74_v23  ;;  %v84_v42 = vadd.f32 %v82_v16, %v73_v28 }
  0x8c   :  { %v89_v62 = vpop.permute.xlu1 %88  ;;  %v87_v63 = vpop.permute.xlu0 %86 }
  0x8d   :  { %v94_v29 = vmul.f32 %v1578_v7, %v89_v62  ;;  %v93_v30 = vmul.f32 %v1583_v8, %v87_v63  ;;  %v139_v63 = vmul.f32 %v1635_v53, %v1340_v10 }
  0x8e   :  { %462 = vrot.lane.b32.xlu1 %v1474_v25, %s1266_s20  ;;  %460 = vrot.lane.b32.xlu0 %v1478_v26, %s1266_s20 }
  0x8f   :  { %v96_v47 = vadd.f32 %v94_v29, %v85_v41  ;;  %v95_v48 = vadd.f32 %v93_v30, %v84_v42  ;;  %v1673_v30 = vld [vmem:[%s2517_s1 + $0xb8] sm:$0xff]  ;;  %v1678_v41 = vld [vmem:[%s2517_s1 + $0xb0] sm:$0xff] }
  0x90   :  { %v105_v20 = vpop.permute.xlu1 %104  ;;  %v103_v22 = vpop.permute.xlu0 %102  ;;  %2585 = vst [vmem:[#allocation3_spill] sm:$0xff] %v1673_v30  ;;  %2586 = vst [vmem:[#allocation4_spill] sm:$0xff] %v1678_v41  ;;  %v1687_v42 = vld [vmem:[%s2516_s0 + $0x10] sm:$0xff] }
  0x91   :  { %v110_v43 = vmul.f32 %v1597_v17, %v105_v20  ;;  %v109_v44 = vmul.f32 %v1602_v21, %v103_v22 }
  0x92   :  { %473 = vrot.lane.b32.xlu1 %v1474_v25, %s1267_s21  ;;  %471 = vrot.lane.b32.xlu0 %v1478_v26, %s1267_s21 }
  0x93   :  { %v112_v57 = vadd.f32 %v110_v43, %v96_v47  ;;  %v111_v62 = vadd.f32 %v109_v44, %v95_v48  ;;  %v1692_v43 = vld [vmem:[%s2516_s0 + $0x18] sm:$0xff]  ;;  %v1697_v44 = vld [vmem:[%s2517_s1 + $0xc8] sm:$0xff] }
  0x94   :  { %v116_v45 = vpop.permute.xlu1 %115  ;;  %v114_v46 = vpop.permute.xlu0 %113  ;;  %2587 = vst [vmem:[#allocation5_spill] sm:$0xff] %v1697_v44 }
  0x95   :  { %v121_v51 = vmul.f32 %v1613_v32, %v116_v45  ;;  %v120_v52 = vmul.f32 %v1618_v35, %v114_v46  ;;  %v1702_v45 = vld [vmem:[%s2517_s1 + $0xc0] sm:$0xff] }
  0x96   :  { %489 = vrot.lane.b32.xlu1 %v1622_v36, %s1263_s17  ;;  %487 = vrot.lane.b32.xlu0 %v1626_v38, %s1263_s17  ;;  %2588 = vst [vmem:[#allocation6_spill] sm:$0xff] %v1702_v45 }
  0x97   :  { %v123_v6 = vadd.f32 %v121_v51, %v112_v57  ;;  %v122_v9 = vadd.f32 %v120_v52, %v111_v62  ;;  %v1709_v52 = vld [vmem:[%s2517_s1 + $0xd8] sm:$0xff]  ;;  %v1714_v57 = vld [vmem:[%s2517_s1 + $0xd0] sm:$0xff]  ;;  %v565_v62 = vrot.slane %v1687_v42, 5 }
  0x98   :  { %v127_v0 = vpop.permute.xlu1 %126  ;;  %v125_v4 = vpop.permute.xlu0 %124  ;;  %2589 = vst [vmem:[#allocation7_spill] sm:$0xff] %v1709_v52  ;;  %2590 = vst [vmem:[#allocation8_spill] sm:$0xff] %v1714_v57 }
  0x99   :  { %v132_v12 = vmul.f32 %v1649_v55, %v127_v0  ;;  %v131_v13 = vmul.f32 %v1654_v56, %v125_v4  ;;  %v1727_v4 = vld [vmem:[%s2517_s1 + $0xe8] sm:$0xff] }
  0x9a   :  { %500 = vrot.lane.b32.xlu1 %v1622_v36, %s1262_s16  ;;  %498 = vrot.lane.b32.xlu0 %v1626_v38, %s1262_s16  ;;  %2591 = vst [vmem:[#allocation9_spill] sm:$0xff] %v1727_v4 }
  0x9b   :  { %v134_v16 = vadd.f32 %v132_v12, %v123_v6  ;;  %v133_v20 = vadd.f32 %v131_v13, %v122_v9  ;;  %v1732_v9 = vld [vmem:[%s2517_s1 + $0xe0] sm:$0xff] }
  0x9c   :  { %v145_v10 = vpop.permute.xlu1 %144  ;;  %v143_v22 = vpop.permute.xlu0 %142  ;;  %2592 = vst [vmem:[#allocation10_spill] sm:$0xff] %v1732_v9 }
  0x9d   :  { %v141_v23 = vadd.f32 %v139_v63, %v134_v16  ;;  %v140_v28 = vadd.f32 %v138_v3, %v133_v20  ;;  %v150_v48 = vmul.f32 %v1673_v30, %v145_v10  ;;  %v149_v51 = vmul.f32 %v1678_v41, %v143_v22  ;;  %v1743_v22 = vld [vmem:[%s2517_s1 + $0xf8] sm:$0xff] }
  0x9e   :  { %511 = vrot.lane.b32.xlu1 %v1622_v36, %s1264_s18  ;;  %509 = vrot.lane.b32.xlu0 %v1626_v38, %s1264_s18  ;;  %v566_v63 = vrot.slane %v1692_v43, 5  ;;  %2593 = vst [vmem:[#allocation11_spill] sm:$0xff] %v1743_v22  ;;  %v1765_v30 = vld [vmem:[%s2517_s1 + $0x118] sm:$0xff] }
  0x9f   :  { %v152_v13 = vadd.f32 %v150_v48, %v141_v23  ;;  %v151_v16 = vadd.f32 %v149_v51, %v140_v28  ;;  %v1748_v23 = vld [vmem:[%s2517_s1 + $0xf0] sm:$0xff]  ;;  %2595 = vst [vmem:[#allocation13_spill] sm:$0xff] %v1765_v30 }
  0xa0   :  { %v156_v11 = vpop.permute.xlu1 %155  ;;  %v154_v29 = vpop.permute.xlu0 %153  ;;  %2594 = vst [vmem:[#allocation12_spill] sm:$0xff] %v1748_v23  ;;  %v1752_v28 = vsel %vm22_vm0, %v565_v62, %v566_v63 }
  0xa1   :  { %v161_v0 = vmul.f32 %v1697_v44, %v156_v11  ;;  %v160_v3 = vmul.f32 %v1702_v45, %v154_v29  ;;  %v1756_v11 = vsel %vm22_vm0, %v566_v63, %v565_v62  ;;  %v1770_v62 = vld [vmem:[%s2517_s1 + $0x110] sm:$0xff]  ;;  %v1784_v63 = vld [vmem:[%s2517_s1 + $0x100] sm:$0xff] }
  0xa2   :  { %529 = vrot.lane.b32.xlu1 %v1622_v36, %s1265_s19  ;;  %527 = vrot.lane.b32.xlu0 %v1626_v38, %s1265_s19  ;;  %2596 = vst [vmem:[#allocation14_spill] sm:$0xff] %v1770_v62  ;;  %2598 = vst [vmem:[#allocation16_spill] sm:$0xff] %v1784_v63 }
  0xa3   :  { %v163_v29 = vadd.f32 %v161_v0, %v152_v13  ;;  %v217_v13 = vmul.f32 %v1765_v30, %v1375_v14 }
  0xa4   :  { %v167_v46 = vpop.permute.xlu1 %166  ;;  %v165_v47 = vpop.permute.xlu0 %164 }
  0xa5   :  { %v172_v20 = vmul.f32 %v1709_v52, %v167_v46  ;;  %v171_v10 = vmul.f32 %v1714_v57, %v165_v47  ;;  %v162_v46 = vadd.f32 %v160_v3, %v151_v16  ;;  %v216_v16 = vmul.f32 %v1770_v62, %v1379_v15  ;;  %v1852_v62 = vld [vmem:[%s2517_s1 + $0x140] sm:$0xff] }
  0xa6   :  { %540 = vrot.lane.b32.xlu1 %v1622_v36, %s1266_s20  ;;  %538 = vrot.lane.b32.xlu0 %v1626_v38, %s1266_s20  ;;  %2603 = vst [vmem:[#allocation21_spill] sm:$0xff] %v1852_v62 }
  0xa7   :  { %v174_v52 = vadd.f32 %v172_v20, %v163_v29  ;;  %v173_v45 = vadd.f32 %v171_v10, %v162_v46 }
  0xa8   :  { %v183_v6 = vpop.permute.xlu1 %182  ;;  %v181_v12 = vpop.permute.xlu0 %180 }
  0xa9   :  { %v188_v47 = vmul.f32 %v1727_v4, %v183_v6  ;;  %v187_v48 = vmul.f32 %v1732_v9, %v181_v12 }
  0xaa   :  { %551 = vrot.lane.b32.xlu1 %v1622_v36, %s1267_s21  ;;  %549 = vrot.lane.b32.xlu0 %v1626_v38, %s1267_s21 }
  0xab   :  { %v190_v0 = vadd.f32 %v188_v47, %v174_v52  ;;  %v189_v3 = vadd.f32 %v187_v48, %v173_v45 }
  0xac   :  { %v194_v51 = vpop.permute.xlu1 %193  ;;  %v192_v57 = vpop.permute.xlu0 %191 }
  0xad   :  { %v199_v44 = vmul.f32 %v1743_v22, %v194_v51  ;;  %v198_v41 = vmul.f32 %v1748_v23, %v192_v57  ;;  %v1779_v57 = vld [vmem:[%s2517_s1 + $0x108] sm:$0xff]  ;;  %v1880_v23 = vld [vmem:[%s2517_s1 + $0x160] sm:$0xff] }
  0xae   :  { %571 = vrot.lane.b32.xlu1 %v1752_v28, %s1263_s17  ;;  %569 = vrot.lane.b32.xlu0 %v1756_v11, %s1263_s17  ;;  %2597 = vst [vmem:[#allocation15_spill] sm:$0xff] %v1779_v57  ;;  %2607 = vst [vmem:[#allocation25_spill] sm:$0xff] %v1880_v23 }
  0xaf   :  { %v201_v20 = vadd.f32 %v199_v44, %v190_v0  ;;  %v200_v10 = vadd.f32 %v198_v41, %v189_v3  ;;  %v635_v3 = vrot.slane %v1687_v42, 6 }
  0xb0   :  { %v205_v6 = vpop.permute.xlu1 %204  ;;  %v203_v12 = vpop.permute.xlu0 %202 }
  0xb1   :  { %v210_v29 = vmul.f32 %v1779_v57, %v205_v6  ;;  %v209_v46 = vmul.f32 %v1784_v63, %v203_v12  ;;  %v636_v6 = vrot.slane %v1692_v43, 6  ;;  %v1813_v12 = vld [vmem:[%s2517_s1 + $0x128] sm:$0xff] }
  0xb2   :  { %581 = vrot.lane.b32.xlu1 %v1752_v28, %s1262_s16  ;;  %579 = vrot.lane.b32.xlu0 %v1756_v11, %s1262_s16  ;;  %2599 = vst [vmem:[#allocation17_spill] sm:$0xff] %v1813_v12  ;;  %v1847_v57 = vld [vmem:[%s2517_s1 + $0x148] sm:$0xff] }
  0xb3   :  { %v212_v45 = vadd.f32 %v210_v29, %v201_v20  ;;  %v211_v52 = vadd.f32 %v209_v46, %v200_v10  ;;  %v1823_v10 = vld [vmem:[%s2517_s1 + $0x138] sm:$0xff]  ;;  %v1828_v29 = vld [vmem:[%s2517_s1 + $0x130] sm:$0xff]  ;;  %v1842_v63 = vsel %vm99_vm1, %v636_v6, %v635_v3 }
  0xb4   :  { %v223_v47 = vpop.permute.xlu1 %222  ;;  %v221_v48 = vpop.permute.xlu0 %220  ;;  %2601 = vst [vmem:[#allocation19_spill] sm:$0xff] %v1823_v10  ;;  %2602 = vst [vmem:[#allocation20_spill] sm:$0xff] %v1828_v29 }
  0xb5   :  { %v219_v14 = vadd.f32 %v217_v13, %v212_v45  ;;  %v218_v51 = vadd.f32 %v216_v16, %v211_v52  ;;  %v1818_v13 = vld [vmem:[%s2517_s1 + $0x120] sm:$0xff]  ;;  %v228_v46 = vmul.f32 %v1813_v12, %v223_v47  ;;  %v1838_v52 = vsel %vm99_vm1, %v635_v3, %v636_v6  ;;  %v1859_v3 = vld [vmem:[%s2517_s1 + $0x158] sm:$0xff]  ;;  %v1864_v6 = vld [vmem:[%s2517_s1 + $0x150] sm:$0xff] }
  0xb6   :  { %591 = vrot.lane.b32.xlu1 %v1752_v28, %s1264_s18  ;;  %589 = vrot.lane.b32.xlu0 %v1756_v11, %s1264_s18  ;;  %2600 = vst [vmem:[#allocation18_spill] sm:$0xff] %v1818_v13  ;;  %v227_v45 = vmul.f32 %v1818_v13, %v221_v48  ;;  %2604 = vst [vmem:[#allocation22_spill] sm:$0xff] %v1859_v3 }
  0xb7   :  { %2605 = vst [vmem:[#allocation23_spill] sm:$0xff] %v1864_v6  ;;  %v230_v30 = vadd.f32 %v228_v46, %v219_v14 }
  0xb8   :  { %v234_v15 = vpop.permute.xlu1 %233  ;;  %v232_v41 = vpop.permute.xlu0 %231 }
  0xb9   :  { %v239_v13 = vmul.f32 %v1823_v10, %v234_v15  ;;  %v238_v12 = vmul.f32 %v1828_v29, %v232_v41  ;;  %v229_v15 = vadd.f32 %v227_v45, %v218_v51  ;;  %v1875_v10 = vld [vmem:[%s2517_s1 + $0x168] sm:$0xff] }
  0xba   :  { %607 = vrot.lane.b32.xlu1 %v1752_v28, %s1265_s19  ;;  %605 = vrot.lane.b32.xlu0 %v1756_v11, %s1265_s19  ;;  %2606 = vst [vmem:[#allocation24_spill] sm:$0xff] %v1875_v10 }
  0xbb   :  { %v241_v4 = vadd.f32 %v239_v13, %v230_v30  ;;  %v240_v56 = vadd.f32 %v238_v12, %v229_v15 }
  0xbc   :  { %v245_v44 = vpop.permute.xlu1 %244  ;;  %v243_v0 = vpop.permute.xlu0 %242 }
  0xbd   :  { %v250_v41 = vmul.f32 %v1847_v57, %v245_v44  ;;  %v249_v29 = vmul.f32 %v1852_v62, %v243_v0  ;;  %v1887_v44 = vld [vmem:[%s2517_s1 + $0x178] sm:$0xff]  ;;  %v1892_v0 = vld [vmem:[%s2517_s1 + $0x170] sm:$0xff]  ;;  %v1905_v62 = vld [vmem:[%s2517_s1 + $0x188] sm:$0xff] }
  0xbe   :  { %617 = vrot.lane.b32.xlu1 %v1752_v28, %s1266_s20  ;;  %615 = vrot.lane.b32.xlu0 %v1756_v11, %s1266_s20  ;;  %2608 = vst [vmem:[#allocation26_spill] sm:$0xff] %v1887_v44  ;;  %2609 = vst [vmem:[#allocation27_spill] sm:$0xff] %v1892_v0 }
  0xbf   :  { %v252_v30 = vadd.f32 %v250_v41, %v241_v4  ;;  %v251_v12 = vadd.f32 %v249_v29, %v240_v56  ;;  %2610 = vst [vmem:[#allocation28_spill] sm:$0xff] %v1905_v62  ;;  %v1910_v56 = vld [vmem:[%s2517_s1 + $0x180] sm:$0xff]  ;;  %v290_v41 = vmul.f32 %v1905_v62, %v1296_v2 }
  0xc0   :  { %v256_v16 = vpop.permute.xlu1 %255  ;;  %v254_v20 = vpop.permute.xlu0 %253  ;;  %2611 = vst [vmem:[#allocation29_spill] sm:$0xff] %v1910_v56  ;;  %v1942_v2 = vld [vmem:[%s2517_s1 + $0x1a0] sm:$0xff] }
  0xc1   :  { %v261_v14 = vmul.f32 %v1859_v3, %v256_v16  ;;  %v260_v51 = vmul.f32 %v1864_v6, %v254_v20  ;;  %2615 = vst [vmem:[#allocation33_spill] sm:$0xff] %v1942_v2 }
  0xc2   :  { %627 = vrot.lane.b32.xlu1 %v1752_v28, %s1267_s21  ;;  %625 = vrot.lane.b32.xlu0 %v1756_v11, %s1267_s21 }
  0xc3   :  { %v263_v45 = vadd.f32 %v261_v14, %v252_v30  ;;  %v262_v15 = vadd.f32 %v260_v51, %v251_v12  ;;  %v289_v14 = vmul.f32 %v1910_v56, %v1291_v1  ;;  %v1923_v51 = vld [vmem:[%s2517_s1 + $0x198] sm:$0xff]  ;;  %v1928_v30 = vld [vmem:[%s2517_s1 + $0x190] sm:$0xff]  ;;  %v1937_v1 = vld [vmem:[%s2517_s1 + $0x1a8] sm:$0xff] }
  0xc4   :  { %v267_v47 = vpop.permute.xlu1 %266  ;;  %v265_v48 = vpop.permute.xlu0 %264  ;;  %2612 = vst [vmem:[#allocation30_spill] sm:$0xff] %v1923_v51  ;;  %2613 = vst [vmem:[#allocation31_spill] sm:$0xff] %v1928_v30 }
  0xc5   :  { %v272_v13 = vmul.f32 %v1875_v10, %v267_v47  ;;  %v271_v16 = vmul.f32 %v1880_v23, %v265_v48  ;;  %2614 = vst [vmem:[#allocation32_spill] sm:$0xff] %v1937_v1  ;;  %v2005_v10 = vld [vmem:[%s2517_s1 + $0x1f8] sm:$0xff] }
  0xc6   :  { %641 = vrot.lane.b32.xlu1 %v1838_v52, %s1263_s17  ;;  %639 = vrot.lane.b32.xlu0 %v1842_v63, %s1263_s17  ;;  %2620 = vst [vmem:[#allocation38_spill] sm:$0xff] %v2005_v10 }
  0xc7   :  { %v274_v4 = vadd.f32 %v272_v13, %v263_v45 }
  0xc8   :  { %v278_v22 = vpop.permute.xlu1 %277  ;;  %v276_v9 = vpop.permute.xlu0 %275 }
  0xc9   :  { %v283_v6 = vmul.f32 %v1887_v44, %v278_v22  ;;  %v282_v3 = vmul.f32 %v1892_v0, %v276_v9  ;;  %v273_v22 = vadd.f32 %v271_v16, %v262_v15  ;;  %v1949_v15 = vld [vmem:[%s2517_s1 + $0x1b8] sm:$0xff] }
  0xca   :  { %651 = vrot.lane.b32.xlu1 %v1838_v52, %s1262_s16  ;;  %649 = vrot.lane.b32.xlu0 %v1842_v63, %s1262_s16  ;;  %2616 = vst [vmem:[#allocation34_spill] sm:$0xff] %v1949_v15 }
  0xcb   :  { %v285_v47 = vadd.f32 %v283_v6, %v274_v4  ;;  %v284_v48 = vadd.f32 %v282_v3, %v273_v22  ;;  %v1954_v4 = vld [vmem:[%s2517_s1 + $0x1b0] sm:$0xff] }
  0xcc   :  { %v296_v20 = vpop.permute.xlu1 %295  ;;  %v294_v46 = vpop.permute.xlu0 %293  ;;  %2617 = vst [vmem:[#allocation35_spill] sm:$0xff] %v1954_v4 }
  0xcd   :  { %v292_v12 = vadd.f32 %v290_v41, %v285_v47  ;;  %v301_v13 = vmul.f32 %v1923_v51, %v296_v20  ;;  %v291_v16 = vadd.f32 %v289_v14, %v284_v48  ;;  %v300_v45 = vmul.f32 %v1928_v30, %v294_v46  ;;  %v1967_v48 = vld [vmem:[%s2517_s1 + $0x1c8] sm:$0xff]  ;;  %v1972_v14 = vld [vmem:[%s2517_s1 + $0x1c0] sm:$0xff] }
  0xce   :  { %661 = vrot.lane.b32.xlu1 %v1838_v52, %s1264_s18  ;;  %659 = vrot.lane.b32.xlu0 %v1842_v63, %s1264_s18  ;;  %v705_v20 = vrot.slane %v1687_v42, 7  ;;  %v706_v46 = vrot.slane %v1692_v43, 7 }
  0xcf   :  { %v303_v51 = vadd.f32 %v301_v13, %v292_v12  ;;  %v302_v56 = vadd.f32 %v300_v45, %v291_v16  ;;  %v1988_v12 = vld [vmem:[%s2517_s1 + $0x1d0] sm:$0xff] }
  0xd0   :  { %v307_v29 = vpop.permute.xlu1 %306  ;;  %v305_v9 = vpop.permute.xlu0 %304  ;;  %2619 = vst [vmem:[#allocation37_spill] sm:$0xff] %v1988_v12 }
  0xd1   :  { %v312_v22 = vmul.f32 %v1937_v1, %v307_v29  ;;  %v311_v47 = vmul.f32 %v1942_v2, %v305_v9  ;;  %v1983_v9 = vld [vmem:[%s2517_s1 + $0x1d8] sm:$0xff] }
  0xd2   :  { %677 = vrot.lane.b32.xlu1 %v1838_v52, %s1265_s19  ;;  %675 = vrot.lane.b32.xlu0 %v1842_v63, %s1265_s19  ;;  %2618 = vst [vmem:[#allocation36_spill] sm:$0xff] %v1983_v9 }
  0xd3   :  { %v314_v13 = vadd.f32 %v312_v22, %v303_v51  ;;  %v313_v16 = vadd.f32 %v311_v47, %v302_v56  ;;  %v2010_v56 = vld [vmem:[%s2517_s1 + $0x1f0] sm:$0xff]  ;;  %v2024_v51 = vld [vmem:[%s2517_s1 + $0x1e0] sm:$0xff] }
  0xd4   :  { %v318_v3 = vpop.permute.xlu1 %317  ;;  %v316_v6 = vpop.permute.xlu0 %315  ;;  %2621 = vst [vmem:[#allocation39_spill] sm:$0xff] %v2010_v56  ;;  %2623 = vst [vmem:[#allocation41_spill] sm:$0xff] %v2024_v51  ;;  %v367_v22 = vmul.f32 %v2010_v56, %v1438_v19 }
  0xd5   :  { %v323_v62 = vmul.f32 %v1949_v15, %v318_v3  ;;  %v322_v29 = vmul.f32 %v1954_v4, %v316_v6  ;;  %v1992_v3 = vsel %vm177_vm2, %v705_v20, %v706_v46  ;;  %v1996_v6 = vsel %vm177_vm2, %v706_v46, %v705_v20 }
  0xd6   :  { %687 = vrot.lane.b32.xlu1 %v1838_v52, %s1266_s20  ;;  %685 = vrot.lane.b32.xlu0 %v1842_v63, %s1266_s20  ;;  %v368_v46 = vmul.f32 %v2005_v10, %v1434_v18  ;;  %v2115_v10 = vld [vmem:[%s2517_s1 + $0x268] sm:$0xff] }
  0xd7   :  { %v325_v1 = vadd.f32 %v323_v62, %v314_v13  ;;  %v324_v0 = vadd.f32 %v322_v29, %v313_v16  ;;  %v2019_v62 = vld [vmem:[%s2517_s1 + $0x1e8] sm:$0xff]  ;;  %2634 = vst [vmem:[#allocation52_spill] sm:$0xff] %v2115_v10 }
  0xd8   :  { %v334_v41 = vpop.permute.xlu1 %333  ;;  %v332_v30 = vpop.permute.xlu0 %331  ;;  %2622 = vst [vmem:[#allocation40_spill] sm:$0xff] %v2019_v62 }
  0xd9   :  { %v339_v45 = vmul.f32 %v1967_v48, %v334_v41  ;;  %v338_v4 = vmul.f32 %v1972_v14, %v332_v30 }
  0xda   :  { %697 = vrot.lane.b32.xlu1 %v1838_v52, %s1267_s21  ;;  %695 = vrot.lane.b32.xlu0 %v1842_v63, %s1267_s21 }
  0xdb   :  { %v341_v30 = vadd.f32 %v339_v45, %v325_v1 }
  0xdc   :  { %v345_v15 = vpop.permute.xlu1 %344  ;;  %v343_v2 = vpop.permute.xlu0 %342 }
  0xdd   :  { %v350_v44 = vmul.f32 %v1983_v9, %v345_v15  ;;  %v349_v23 = vmul.f32 %v1988_v12, %v343_v2  ;;  %v340_v2 = vadd.f32 %v338_v4, %v324_v0  ;;  %v2235_v9 = vld [vmem:[%s2517_s1 + $0x2d8] sm:$0xff] }
  0xde   :  { %711 = vrot.lane.b32.xlu1 %v1992_v3, %s1263_s17  ;;  %709 = vrot.lane.b32.xlu0 %v1996_v6, %s1263_s17 }
  0xdf   :  { %v352_v47 = vadd.f32 %v350_v44, %v341_v30  ;;  %v351_v41 = vadd.f32 %v349_v23, %v340_v2  ;;  %v2043_v44 = vld [vmem:[%s2517_s1 + $0x208] sm:$0xff]  ;;  %v2048_v30 = vld [vmem:[%s2517_s1 + $0x200] sm:$0xff]  ;;  %v2057_v2 = vld [vmem:[%s2517_s1 + $0x218] sm:$0xff] }
  0xe0   :  { %v356_v15 = vpop.permute.xlu1 %355  ;;  %v354_v20 = vpop.permute.xlu0 %353  ;;  %2624 = vst [vmem:[#allocation42_spill] sm:$0xff] %v2043_v44  ;;  %2625 = vst [vmem:[#allocation43_spill] sm:$0xff] %v2048_v30 }
  0xe1   :  { %v361_v29 = vmul.f32 %v2019_v62, %v356_v15  ;;  %v360_v13 = vmul.f32 %v2024_v51, %v354_v20  ;;  %2626 = vst [vmem:[#allocation44_spill] sm:$0xff] %v2057_v2  ;;  %v2062_v15 = vld [vmem:[%s2517_s1 + $0x210] sm:$0xff] }
  0xe2   :  { %721 = vrot.lane.b32.xlu1 %v1992_v3, %s1262_s16  ;;  %719 = vrot.lane.b32.xlu0 %v1996_v6, %s1262_s16  ;;  %2627 = vst [vmem:[#allocation45_spill] sm:$0xff] %v2062_v15 }
  0xe3   :  { %v363_v0 = vadd.f32 %v361_v29, %v352_v47  ;;  %v362_v1 = vadd.f32 %v360_v13, %v351_v41  ;;  %v2069_v41 = vld [vmem:[%s2517_s1 + $0x228] sm:$0xff]  ;;  %v2074_v29 = vld [vmem:[%s2517_s1 + $0x220] sm:$0xff] }
  0xe4   :  { %v374_v4 = vpop.permute.xlu1 %373  ;;  %v372_v16 = vpop.permute.xlu0 %371  ;;  %2628 = vst [vmem:[#allocation46_spill] sm:$0xff] %v2069_v41  ;;  %2629 = vst [vmem:[#allocation47_spill] sm:$0xff] %v2074_v29 }
  0xe5   :  { %v370_v18 = vadd.f32 %v368_v46, %v363_v0  ;;  %v369_v45 = vadd.f32 %v367_v22, %v362_v1  ;;  %v379_v22 = vmul.f32 %v2043_v44, %v374_v4  ;;  %v378_v47 = vmul.f32 %v2048_v30, %v372_v16  ;;  %v2085_v1 = vld [vmem:[%s2517_s1 + $0x238] sm:$0xff]  ;;  %v2090_v16 = vld [vmem:[%s2517_s1 + $0x230] sm:$0xff] }
  0xe6   :  { %731 = vrot.lane.b32.xlu1 %v1992_v3, %s1264_s18  ;;  %729 = vrot.lane.b32.xlu0 %v1996_v6, %s1264_s18  ;;  %2630 = vst [vmem:[#allocation48_spill] sm:$0xff] %v2085_v1  ;;  %2631 = vst [vmem:[#allocation49_spill] sm:$0xff] %v2090_v16 }
  0xe7   :  { %v381_v44 = vadd.f32 %v379_v22, %v370_v18  ;;  %v380_v51 = vadd.f32 %v378_v47, %v369_v45  ;;  %v2106_v18 = vld [vmem:[%s2517_s1 + $0x240] sm:$0xff] }
  0xe8   :  { %v385_v19 = vpop.permute.xlu1 %384  ;;  %v383_v23 = vpop.permute.xlu0 %382  ;;  %2633 = vst [vmem:[#allocation51_spill] sm:$0xff] %v2106_v18 }
  0xe9   :  { %v390_v13 = vmul.f32 %v2057_v2, %v385_v19  ;;  %v389_v0 = vmul.f32 %v2062_v15, %v383_v23  ;;  %v2101_v23 = vld [vmem:[%s2517_s1 + $0x248] sm:$0xff] }
  0xea   :  { %747 = vrot.lane.b32.xlu1 %v1992_v3, %s1265_s19  ;;  %745 = vrot.lane.b32.xlu0 %v1996_v6, %s1265_s19  ;;  %2632 = vst [vmem:[#allocation50_spill] sm:$0xff] %v2101_v23 }
  0xeb   :  { %v392_v45 = vadd.f32 %v390_v13, %v381_v44  ;;  %v2134_v44 = vld [vmem:[%s2517_s1 + $0x250] sm:$0xff] }
  0xec   :  { %v396_v20 = vpop.permute.xlu1 %395  ;;  %v394_v46 = vpop.permute.xlu0 %393  ;;  %2637 = vst [vmem:[#allocation55_spill] sm:$0xff] %v2134_v44 }
  0xed   :  { %v401_v62 = vmul.f32 %v2069_v41, %v396_v20  ;;  %v400_v19 = vmul.f32 %v2074_v29, %v394_v46  ;;  %v391_v20 = vadd.f32 %v389_v0, %v380_v51  ;;  %v2120_v51 = vld [vmem:[%s2517_s1 + $0x260] sm:$0xff] }
  0xee   :  { %757 = vrot.lane.b32.xlu1 %v1992_v3, %s1266_s20  ;;  %755 = vrot.lane.b32.xlu0 %v1996_v6, %s1266_s20  ;;  %2635 = vst [vmem:[#allocation53_spill] sm:$0xff] %v2120_v51 }
  0xef   :  { %v403_v41 = vadd.f32 %v401_v62, %v392_v45  ;;  %v402_v15 = vadd.f32 %v400_v19, %v391_v20  ;;  %v2129_v62 = vld [vmem:[%s2517_s1 + $0x258] sm:$0xff]  ;;  %v445_v19 = vmul.f32 %v2120_v51, %v1478_v26 }
  0xf0   :  { %v412_v4 = vpop.permute.xlu1 %411  ;;  %v410_v30 = vpop.permute.xlu0 %409  ;;  %2636 = vst [vmem:[#allocation54_spill] sm:$0xff] %v2129_v62 }
  0xf1   :  { %v417_v46 = vmul.f32 %v2085_v1, %v412_v4  ;;  %v416_v22 = vmul.f32 %v2090_v16, %v410_v30  ;;  %v446_v4 = vmul.f32 %v2115_v10, %v1474_v25 }
  0xf2   :  { %767 = vrot.lane.b32.xlu1 %v1992_v3, %s1267_s21  ;;  %765 = vrot.lane.b32.xlu0 %v1996_v6, %s1267_s21 }
  0xf3   :  { %v419_v30 = vadd.f32 %v417_v46, %v403_v41 }
  0xf4   :  { %v423_v47 = vpop.permute.xlu1 %422  ;;  %v421_v29 = vpop.permute.xlu0 %420 }
  0xf5   :  { %v428_v2 = vmul.f32 %v2101_v23, %v423_v47  ;;  %v427_v56 = vmul.f32 %v2106_v18, %v421_v29  ;;  %v418_v29 = vadd.f32 %v416_v22, %v402_v15 }
  0xf6   :  { %777 = vrot.lane.b32.xlu1 %v1692_v43, %s1263_s17  ;;  %775 = vrot.lane.b32.xlu0 %v1687_v42, %s1263_s17 }
  0xf7   :  { %v430_v45 = vadd.f32 %v428_v2, %v419_v30  ;;  %v429_v20 = vadd.f32 %v427_v56, %v418_v29  ;;  %v2153_v2 = vld [vmem:[%s2517_s1 + $0x278] sm:$0xff]  ;;  %v2167_v30 = vld [vmem:[%s2517_s1 + $0x288] sm:$0xff]  ;;  %v2172_v29 = vld [vmem:[%s2517_s1 + $0x280] sm:$0xff] }
  0xf8   :  { %v434_v13 = vpop.permute.xlu1 %433  ;;  %v432_v0 = vpop.permute.xlu0 %431  ;;  %2638 = vst [vmem:[#allocation56_spill] sm:$0xff] %v2153_v2  ;;  %2640 = vst [vmem:[#allocation58_spill] sm:$0xff] %v2167_v30 }
  0xf9   :  { %v439_v47 = vmul.f32 %v2129_v62, %v434_v13  ;;  %v438_v18 = vmul.f32 %v2134_v44, %v432_v0  ;;  %2641 = vst [vmem:[#allocation59_spill] sm:$0xff] %v2172_v29 }
  0xfa   :  { %787 = vrot.lane.b32.xlu1 %v1692_v43, %s1262_s16  ;;  %785 = vrot.lane.b32.xlu0 %v1687_v42, %s1262_s16 }
  0xfb   :  { %v441_v15 = vadd.f32 %v439_v47, %v430_v45  ;;  %v440_v41 = vadd.f32 %v438_v18, %v429_v20  ;;  %v2158_v18 = vld [vmem:[%s2517_s1 + $0x270] sm:$0xff]  ;;  %v2179_v45 = vld [vmem:[%s2517_s1 + $0x298] sm:$0xff]  ;;  %v841_v47 = vrot.slane %v1687_v42, 1 }
  0xfc   :  { %v452_v46 = vpop.permute.xlu1 %451  ;;  %v450_v22 = vpop.permute.xlu0 %449  ;;  %2639 = vst [vmem:[#allocation57_spill] sm:$0xff] %v2158_v18  ;;  %2642 = vst [vmem:[#allocation60_spill] sm:$0xff] %v2179_v45  ;;  %v2184_v20 = vld [vmem:[%s2517_s1 + $0x290] sm:$0xff] }
  0xfd   :  { %v448_v25 = vadd.f32 %v446_v4, %v441_v15  ;;  %v447_v10 = vadd.f32 %v445_v19, %v440_v41  ;;  %v457_v4 = vmul.f32 %v2153_v2, %v452_v46  ;;  %v456_v19 = vmul.f32 %v2158_v18, %v450_v22  ;;  %2643 = vst [vmem:[#allocation61_spill] sm:$0xff] %v2184_v20  ;;  %v2197_v22 = vld [vmem:[%s2517_s1 + $0x2a8] sm:$0xff]  ;;  %v2202_v2 = vld [vmem:[%s2517_s1 + $0x2a0] sm:$0xff] }
  0xfe   :  { %797 = vrot.lane.b32.xlu1 %v1692_v43, %s1264_s18  ;;  %795 = vrot.lane.b32.xlu0 %v1687_v42, %s1264_s18  ;;  %v842_v15 = vrot.slane %v1692_v43, 1 }
  0xff   :  { %v459_v62 = vadd.f32 %v457_v4, %v448_v25  ;;  %v458_v51 = vadd.f32 %v456_v19, %v447_v10  ;;  %v2218_v25 = vld [vmem:[%s2517_s1 + $0x2b0] sm:$0xff] }
 0x100   :  { %v463_v26 = vpop.permute.xlu1 %462  ;;  %v461_v56 = vpop.permute.xlu0 %460  ;;  %v2222_v10 = vsel %vm328_vm3, %v842_v15, %v841_v47 }
 0x101   :  { %v468_v41 = vmul.f32 %v2167_v30, %v463_v26  ;;  %v467_v46 = vmul.f32 %v2172_v29, %v461_v56  ;;  %v2213_v56 = vld [vmem:[%s2517_s1 + $0x2b8] sm:$0xff] }
 0x102   :  { %813 = vrot.lane.b32.xlu1 %v1692_v43, %s1265_s19  ;;  %811 = vrot.lane.b32.xlu0 %v1687_v42, %s1265_s19 }
 0x103   :  { %v469_v4 = vadd.f32 %v467_v46, %v458_v51  ;;  %v2240_v51 = vld [vmem:[%s2517_s1 + $0x2d0] sm:$0xff] }
 0x104   :  { %v474_v13 = vpop.permute.xlu1 %473  ;;  %v472_v0 = vpop.permute.xlu0 %471 }
 0x105   :  { %v479_v23 = vmul.f32 %v2179_v45, %v474_v13  ;;  %v478_v26 = vmul.f32 %v2184_v20, %v472_v0  ;;  %v2226_v13 = vsel %vm328_vm3, %v841_v47, %v842_v15  ;;  %v470_v0 = vadd.f32 %v468_v41, %v459_v62  ;;  %v2254_v62 = vld [vmem:[%s2517_s1 + $0x2c0] sm:$0xff] }
 0x106   :  { %823 = vrot.lane.b32.xlu1 %v1692_v43, %s1266_s20  ;;  %821 = vrot.lane.b32.xlu0 %v1687_v42, %s1266_s20  ;;  %v524_v47 = vmul.f32 %v2235_v9, %v1622_v36  ;;  %v523_v15 = vmul.f32 %v2240_v51, %v1626_v38  ;;  %v2269_v36 = vld [vmem:[%s2517_s1 + $0x2e8] sm:$0xff] }
 0x107   :  { %v481_v30 = vadd.f32 %v479_v23, %v470_v0  ;;  %v480_v16 = vadd.f32 %v478_v26, %v469_v4  ;;  %v2249_v23 = vld [vmem:[%s2517_s1 + $0x2c8] sm:$0xff]  ;;  %2644 = vst [vmem:[#allocation62_spill] sm:$0xff] %v2269_v36 }
 0x108   :  { %v490_v18 = vpop.permute.xlu1 %489  ;;  %v488_v44 = vpop.permute.xlu0 %487 }
 0x109   :  { %v495_v19 = vmul.f32 %v2197_v22, %v490_v18  ;;  %v494_v20 = vmul.f32 %v2202_v2, %v488_v44 }
 0x10a   :  { %833 = vrot.lane.b32.xlu1 %v1692_v43, %s1267_s21  ;;  %831 = vrot.lane.b32.xlu0 %v1687_v42, %s1267_s21 }
 0x10b   :  { %v497_v44 = vadd.f32 %v495_v19, %v481_v30  ;;  %v496_v18 = vadd.f32 %v494_v20, %v480_v16  ;;  %v2283_v19 = vld [vmem:[%s2517_s1 + $0x2f8] sm:$0xff] }
 0x10c   :  { %v501_v45 = vpop.permute.xlu1 %500  ;;  %v499_v29 = vpop.permute.xlu0 %498  ;;  %2646 = vst [vmem:[#allocation64_spill] sm:$0xff] %v2283_v19 }
 0x10d   :  { %v506_v1 = vmul.f32 %v2213_v56, %v501_v45  ;;  %v505_v12 = vmul.f32 %v2218_v25, %v499_v29 }
 0x10e   :  { %847 = vrot.lane.b32.xlu1 %v2222_v10, %s1263_s17  ;;  %845 = vrot.lane.b32.xlu0 %v2226_v13, %s1263_s17 }
 0x10f   :  { %v508_v41 = vadd.f32 %v506_v1, %v497_v44  ;;  %v507_v46 = vadd.f32 %v505_v12, %v496_v18  ;;  %v2274_v12 = vld [vmem:[%s2517_s1 + $0x2e0] sm:$0xff]  ;;  %v2288_v44 = vld [vmem:[%s2517_s1 + $0x2f0] sm:$0xff] }
 0x110   :  { %v512_v29 = vpop.permute.xlu1 %511  ;;  %v510_v45 = vpop.permute.xlu0 %509  ;;  %2645 = vst [vmem:[#allocation63_spill] sm:$0xff] %v2274_v12  ;;  %2647 = vst [vmem:[#allocation65_spill] sm:$0xff] %v2288_v44 }
 0x111   :  { %v517_v26 = vmul.f32 %v2249_v23, %v512_v29  ;;  %v516_v0 = vmul.f32 %v2254_v62, %v510_v45 }
 0x112   :  { %857 = vrot.lane.b32.xlu1 %v2222_v10, %s1262_s16  ;;  %855 = vrot.lane.b32.xlu0 %v2226_v13, %s1262_s16 }
 0x113   :  { %v519_v16 = vadd.f32 %v517_v26, %v508_v41  ;;  %v518_v30 = vadd.f32 %v516_v0, %v507_v46  ;;  %v2301_v46 = vld [vmem:[%s2517_s1 + $0x308] sm:$0xff]  ;;  %v2306_v26 = vld [vmem:[%s2517_s1 + $0x300] sm:$0xff] }
 0x114   :  { %v530_v38 = vpop.permute.xlu1 %529  ;;  %v528_v1 = vpop.permute.xlu0 %527 }
 0x115   :  { %v526_v20 = vadd.f32 %v524_v47, %v519_v16  ;;  %v525_v4 = vadd.f32 %v523_v15, %v518_v30  ;;  %v535_v18 = vmul.f32 %v2269_v36, %v530_v38  ;;  %v534_v29 = vmul.f32 %v2274_v12, %v528_v1 }
 0x116   :  { %867 = vrot.lane.b32.xlu1 %v2222_v10, %s1264_s18  ;;  %865 = vrot.lane.b32.xlu0 %v2226_v13, %s1264_s18  ;;  %v911_v36 = vrot.slane %v1687_v42, 2 }
 0x117   :  { %v537_v0 = vadd.f32 %v535_v18, %v526_v20  ;;  %v536_v16 = vadd.f32 %v534_v29, %v525_v4  ;;  %v912_v20 = vrot.slane %v1692_v43, 2 }
 0x118   :  { %v541_v45 = vpop.permute.xlu1 %540  ;;  %v539_v47 = vpop.permute.xlu0 %538 }
 0x119   :  { %v546_v15 = vmul.f32 %v2283_v19, %v541_v45  ;;  %v545_v41 = vmul.f32 %v2288_v44, %v539_v47 }
 0x11a   :  { %883 = vrot.lane.b32.xlu1 %v2222_v10, %s1265_s19  ;;  %881 = vrot.lane.b32.xlu0 %v2226_v13, %s1265_s19 }
 0x11b   :  { %v548_v1 = vadd.f32 %v546_v15, %v537_v0  ;;  %v547_v45 = vadd.f32 %v545_v41, %v536_v16 }
 0x11c   :  { %v552_v30 = vpop.permute.xlu1 %551  ;;  %v550_v38 = vpop.permute.xlu0 %549 }
 0x11d   :  { %v557_v47 = vmul.f32 %v2301_v46, %v552_v30  ;;  %v556_v44 = vmul.f32 %v2306_v26, %v550_v38 }
 0x11e   :  { %893 = vrot.lane.b32.xlu1 %v2222_v10, %s1266_s20  ;;  %891 = vrot.lane.b32.xlu0 %v2226_v13, %s1266_s20 }
 0x11f   :  { %v559_v19 = vadd.f32 %v557_v47, %v548_v1  ;;  %v558_v12 = vadd.f32 %v556_v44, %v547_v45  ;;  %v2330_v44 = vsel %vm406_vm4, %v912_v20, %v911_v36  ;;  %v602_v45 = vmul.f32 %v1534_v49, %v1752_v28 }
 0x120   :  { %v572_v4 = vpop.permute.xlu1 %571  ;;  %v570_v18 = vpop.permute.xlu0 %569 }
 0x121   :  { %561 = vst [vmem:[%s2519_s3 + $0x8] sm:$0xff] %v559_v19  ;;  %560 = vst [vmem:[%s2519_s3] sm:$0xff] %v558_v12  ;;  %v576_v29 = vmul.f32 %v572_v4, %v1470_v24  ;;  %v575_v15 = vmul.f32 %v570_v18, %v1483_v27  ;;  %v2334_v19 = vsel %vm406_vm4, %v911_v36, %v912_v20 }
 0x122   :  { %903 = vrot.lane.b32.xlu1 %v2222_v10, %s1267_s21  ;;  %901 = vrot.lane.b32.xlu0 %v2226_v13, %s1267_s21 }
 0x123   :  { %v578_v24 = vadd.f32 %v576_v29, %v1489_v31  ;;  %v577_v27 = vadd.f32 %v575_v15, %v1499_v33  ;;  %v601_v33 = vmul.f32 %v1539_v50, %v1756_v11 }
 0x124   :  { %v582_v41 = vpop.permute.xlu1 %581  ;;  %v580_v12 = vpop.permute.xlu0 %579 }
 0x125   :  { %v586_v0 = vmul.f32 %v1504_v34, %v582_v41  ;;  %v585_v16 = vmul.f32 %v1509_v37, %v580_v12  ;;  %v982_v41 = vrot.slane %v1692_v43, 3 }
 0x126   :  { %917 = vrot.lane.b32.xlu1 %v2330_v44, %s1263_s17  ;;  %915 = vrot.lane.b32.xlu0 %v2334_v19, %s1263_s17 }
 0x127   :  { %v588_v30 = vadd.f32 %v586_v0, %v578_v24  ;;  %v587_v38 = vadd.f32 %v585_v16, %v577_v27 }
 0x128   :  { %v592_v36 = vpop.permute.xlu1 %591  ;;  %v590_v1 = vpop.permute.xlu0 %589 }
 0x129   :  { %v596_v31 = vmul.f32 %v1515_v39, %v592_v36  ;;  %v595_v34 = vmul.f32 %v1520_v40, %v590_v1 }
 0x12a   :  { %927 = vrot.lane.b32.xlu1 %v2330_v44, %s1262_s16  ;;  %925 = vrot.lane.b32.xlu0 %v2334_v19, %s1262_s16 }
 0x12b   :  { %v598_v37 = vadd.f32 %v596_v31, %v588_v30  ;;  %v597_v47 = vadd.f32 %v595_v34, %v587_v38 }
 0x12c   :  { %v608_v20 = vpop.permute.xlu1 %607  ;;  %v606_v4 = vpop.permute.xlu0 %605 }
 0x12d   :  { %v604_v18 = vadd.f32 %v602_v45, %v598_v37  ;;  %v603_v29 = vadd.f32 %v601_v33, %v597_v47  ;;  %v612_v49 = vmul.f32 %v1552_v58, %v608_v20  ;;  %v611_v39 = vmul.f32 %v1557_v59, %v606_v4  ;;  %v2648_v4 = vld [vmem:[#allocation2_spill] sm:$0xff] }
 0x12e   :  { %937 = vrot.lane.b32.xlu1 %v2330_v44, %s1264_s18  ;;  %935 = vrot.lane.b32.xlu0 %v2334_v19, %s1264_s18  ;;  %v981_v59 = vrot.slane %v1687_v42, 3  ;;  %v671_v37 = vmul.f32 %v1640_v54, %v1842_v63 }
 0x12f   :  { %v614_v40 = vadd.f32 %v612_v49, %v604_v18  ;;  %v613_v50 = vadd.f32 %v611_v39, %v603_v29 }
 0x130   :  { %v618_v28 = vpop.permute.xlu1 %617  ;;  %v616_v11 = vpop.permute.xlu0 %615  ;;  %v2380_v42 = vsel %vm484_vm5, %v982_v41, %v981_v59 }
 0x131   :  { %v622_v12 = vmul.f32 %v1566_v60, %v618_v28  ;;  %v621_v24 = vmul.f32 %v1571_v61, %v616_v11  ;;  %v2384_v60 = vsel %vm484_vm5, %v981_v59, %v982_v41  ;;  %v2649_v28 = vld [vmem:[#allocation3_spill] sm:$0xff]  ;;  %v2651_v59 = vld [vmem:[#allocation5_spill] sm:$0xff] }
 0x132   :  { %953 = vrot.lane.b32.xlu1 %v2330_v44, %s1265_s19  ;;  %951 = vrot.lane.b32.xlu0 %v2334_v19, %s1265_s19 }
 0x133   :  { %v624_v61 = vadd.f32 %v622_v12, %v614_v40  ;;  %v623_v43 = vadd.f32 %v621_v24, %v613_v50  ;;  %v2652_v12 = vld [vmem:[#allocation6_spill] sm:$0xff] }
 0x134   :  { %v628_v15 = vpop.permute.xlu1 %627  ;;  %v626_v58 = vpop.permute.xlu0 %625 }
 0x135   :  { %v632_v16 = vmul.f32 %v1578_v7, %v628_v15  ;;  %v631_v30 = vmul.f32 %v1583_v8, %v626_v58  ;;  %v2650_v15 = vld [vmem:[#allocation4_spill] sm:$0xff] }
 0x136   :  { %963 = vrot.lane.b32.xlu1 %v2330_v44, %s1266_s20  ;;  %961 = vrot.lane.b32.xlu0 %v2334_v19, %s1266_s20 }
 0x137   :  { %v634_v1 = vadd.f32 %v632_v16, %v624_v61  ;;  %v633_v45 = vadd.f32 %v631_v30, %v623_v43  ;;  %v2653_v61 = vld [vmem:[#allocation7_spill] sm:$0xff] }
 0x138   :  { %v642_v27 = vpop.permute.xlu1 %641  ;;  %v640_v0 = vpop.permute.xlu0 %639 }
 0x139   :  { %v646_v7 = vmul.f32 %v1597_v17, %v642_v27  ;;  %v645_v8 = vmul.f32 %v1602_v21, %v640_v0  ;;  %v672_v17 = vmul.f32 %v1635_v53, %v1838_v52 }
 0x13a   :  { %973 = vrot.lane.b32.xlu1 %v2330_v44, %s1267_s21  ;;  %971 = vrot.lane.b32.xlu0 %v2334_v19, %s1267_s21 }
 0x13b   :  { %v648_v5 = vadd.f32 %v646_v7, %v634_v1  ;;  %v647_v34 = vadd.f32 %v645_v8, %v633_v45  ;;  %v2654_v7 = vld [vmem:[#allocation8_spill] sm:$0xff]  ;;  %v2655_v1 = vld [vmem:[#allocation9_spill] sm:$0xff] }
 0x13c   :  { %v652_v38 = vpop.permute.xlu1 %651  ;;  %v650_v36 = vpop.permute.xlu0 %649 }
 0x13d   :  { %v656_v31 = vmul.f32 %v1613_v32, %v652_v38  ;;  %v655_v33 = vmul.f32 %v1618_v35, %v650_v36 }
 0x13e   :  { %987 = vrot.lane.b32.xlu1 %v2380_v42, %s1263_s17  ;;  %985 = vrot.lane.b32.xlu0 %v2384_v60, %s1263_s17 }
 0x13f   :  { %v658_v20 = vadd.f32 %v656_v31, %v648_v5  ;;  %v657_v32 = vadd.f32 %v655_v33, %v647_v34  ;;  %v2656_v31 = vld [vmem:[#allocation10_spill] sm:$0xff] }
 0x140   :  { %v662_v21 = vpop.permute.xlu1 %661  ;;  %v660_v47 = vpop.permute.xlu0 %659 }
 0x141   :  { %v666_v35 = vmul.f32 %v1649_v55, %v662_v21  ;;  %v665_v18 = vmul.f32 %v2648_v4, %v660_v47 }
 0x142   :  { %997 = vrot.lane.b32.xlu1 %v2380_v42, %s1262_s16  ;;  %995 = vrot.lane.b32.xlu0 %v2384_v60, %s1262_s16 }
 0x143   :  { %v668_v29 = vadd.f32 %v666_v35, %v658_v20  ;;  %v667_v49 = vadd.f32 %v665_v18, %v657_v32  ;;  %v2658_v20 = vld [vmem:[#allocation12_spill] sm:$0xff] }
 0x144   :  { %v678_v53 = vpop.permute.xlu1 %677  ;;  %v676_v52 = vpop.permute.xlu0 %675 }
 0x145   :  { %v674_v39 = vadd.f32 %v672_v17, %v668_v29  ;;  %v673_v40 = vadd.f32 %v671_v37, %v667_v49  ;;  %v682_v11 = vmul.f32 %v2649_v28, %v678_v53  ;;  %v681_v58 = vmul.f32 %v2650_v15, %v676_v52  ;;  %v2657_v37 = vld [vmem:[#allocation11_spill] sm:$0xff]  ;;  %v2659_v49 = vld [vmem:[#allocation13_spill] sm:$0xff]  ;;  %v2660_v52 = vld [vmem:[#allocation14_spill] sm:$0xff] }
 0x146   :  { %1007 = vrot.lane.b32.xlu1 %v2380_v42, %s1264_s18  ;;  %1005 = vrot.lane.b32.xlu0 %v2384_v60, %s1264_s18  ;;  %v742_v53 = vmul.f32 %v2659_v49, %v1992_v3 }
 0x147   :  { %v684_v16 = vadd.f32 %v682_v11, %v674_v39  ;;  %v683_v30 = vadd.f32 %v681_v58, %v673_v40  ;;  %v741_v39 = vmul.f32 %v2660_v52, %v1996_v6  ;;  %v2670_v52 = vld [vmem:[#allocation24_spill] sm:$0xff] }
 0x148   :  { %v688_v54 = vpop.permute.xlu1 %687  ;;  %v686_v55 = vpop.permute.xlu0 %685 }
 0x149   :  { %v692_v41 = vmul.f32 %v2651_v59, %v688_v54  ;;  %v691_v24 = vmul.f32 %v2652_v12, %v686_v55  ;;  %v2661_v55 = vld [vmem:[#allocation15_spill] sm:$0xff] }
 0x14a   :  { %1023 = vrot.lane.b32.xlu1 %v2380_v42, %s1265_s19  ;;  %1021 = vrot.lane.b32.xlu0 %v2384_v60, %s1265_s19 }
 0x14b   :  { %v694_v38 = vadd.f32 %v692_v41, %v684_v16  ;;  %v693_v36 = vadd.f32 %v691_v24, %v683_v30 }
 0x14c   :  { %v698_v63 = vpop.permute.xlu1 %697  ;;  %v696_v50 = vpop.permute.xlu0 %695 }
 0x14d   :  { %v702_v43 = vmul.f32 %v2653_v61, %v698_v63  ;;  %v701_v8 = vmul.f32 %v2654_v7, %v696_v50  ;;  %v2662_v50 = vld [vmem:[#allocation16_spill] sm:$0xff]  ;;  %v2663_v61 = vld [vmem:[#allocation17_spill] sm:$0xff] }
 0x14e   :  { %1033 = vrot.lane.b32.xlu1 %v2380_v42, %s1266_s20  ;;  %1031 = vrot.lane.b32.xlu0 %v2384_v60, %s1266_s20 }
 0x14f   :  { %v704_v17 = vadd.f32 %v702_v43, %v694_v38  ;;  %v703_v21 = vadd.f32 %v701_v8, %v693_v36  ;;  %v2664_v43 = vld [vmem:[#allocation18_spill] sm:$0xff]  ;;  %v2665_v36 = vld [vmem:[#allocation19_spill] sm:$0xff] }
 0x150   :  { %v712_v27 = vpop.permute.xlu1 %711  ;;  %v710_v0 = vpop.permute.xlu0 %709 }
 0x151   :  { %v716_v45 = vmul.f32 %v2655_v1, %v712_v27  ;;  %v715_v33 = vmul.f32 %v2656_v31, %v710_v0 }
 0x152   :  { %1043 = vrot.lane.b32.xlu1 %v2380_v42, %s1267_s21  ;;  %1041 = vrot.lane.b32.xlu0 %v2384_v60, %s1267_s21 }
 0x153   :  { %v718_v35 = vadd.f32 %v716_v45, %v704_v17  ;;  %v717_v4 = vadd.f32 %v715_v33, %v703_v21  ;;  %v2666_v45 = vld [vmem:[#allocation20_spill] sm:$0xff]  ;;  %v2667_v17 = vld [vmem:[#allocation21_spill] sm:$0xff] }
 0x154   :  { %v722_v5 = vpop.permute.xlu1 %721  ;;  %v720_v34 = vpop.permute.xlu0 %719 }
 0x155   :  { %v726_v47 = vmul.f32 %v2657_v37, %v722_v5  ;;  %v725_v32 = vmul.f32 %v2658_v20, %v720_v34 }
 0x157   :  { %v728_v40 = vadd.f32 %v726_v47, %v718_v35  ;;  %v727_v54 = vadd.f32 %v725_v32, %v717_v4  ;;  %v2668_v35 = vld [vmem:[#allocation22_spill] sm:$0xff] }
 0x158   :  { %v732_v18 = vpop.permute.xlu1 %731  ;;  %v730_v29 = vpop.permute.xlu0 %729 }
 0x159   :  { %v736_v63 = vmul.f32 %v2661_v55, %v732_v18  ;;  %v735_v28 = vmul.f32 %v2662_v50, %v730_v29  ;;  %v2669_v18 = vld [vmem:[#allocation23_spill] sm:$0xff] }
 0x15b   :  { %v738_v11 = vadd.f32 %v736_v63, %v728_v40  ;;  %v737_v15 = vadd.f32 %v735_v28, %v727_v54  ;;  %v2671_v40 = vld [vmem:[#allocation25_spill] sm:$0xff]  ;;  %v2672_v28 = vld [vmem:[#allocation26_spill] sm:$0xff] }
 0x15c   :  { %v748_v58 = vpop.permute.xlu1 %747  ;;  %v746_v59 = vpop.permute.xlu0 %745 }
 0x15d   :  { %v744_v41 = vadd.f32 %v742_v53, %v738_v11  ;;  %v743_v12 = vadd.f32 %v741_v39, %v737_v15  ;;  %v752_v6 = vmul.f32 %v2663_v61, %v748_v58  ;;  %v751_v7 = vmul.f32 %v2664_v43, %v746_v59  ;;  %v2673_v15 = vld [vmem:[#allocation27_spill] sm:$0xff]  ;;  %v1261_v61 = vld [vmem:[%s2516_s0 + $0x10] sm:$0xff] }
 0x15f   :  { %v754_v33 = vadd.f32 %v752_v6, %v744_v41  ;;  %v753_v5 = vadd.f32 %v751_v7, %v743_v12  ;;  %v2675_v6 = vld [vmem:[#allocation29_spill] sm:$0xff] }
 0x160   :  { %v758_v24 = vpop.permute.xlu1 %757  ;;  %v756_v27 = vpop.permute.xlu0 %755  ;;  %v807_v43 = vmul.f32 %v1261_v61, %v2675_v6 }
 0x161   :  { %v762_v1 = vmul.f32 %v2665_v36, %v758_v24  ;;  %v761_v31 = vmul.f32 %v2666_v45, %v756_v27  ;;  %v2676_v36 = vld [vmem:[#allocation30_spill] sm:$0xff] }
 0x163   :  { %v764_v20 = vadd.f32 %v762_v1, %v754_v33  ;;  %v763_v32 = vadd.f32 %v761_v31, %v753_v5  ;;  %v2677_v31 = vld [vmem:[#allocation31_spill] sm:$0xff]  ;;  %v2678_v5 = vld [vmem:[#allocation32_spill] sm:$0xff] }
 0x164   :  { %v768_v0 = vpop.permute.xlu1 %767  ;;  %v766_v16 = vpop.permute.xlu0 %765 }
 0x165   :  { %v772_v34 = vmul.f32 %v1847_v57, %v768_v0  ;;  %v771_v21 = vmul.f32 %v2667_v17, %v766_v16  ;;  %v1260_v16 = vld [vmem:[%s2516_s0 + $0x18] sm:$0xff] }
 0x166   :  { %v2679_v17 = vld [vmem:[#allocation33_spill] sm:$0xff] }
 0x167   :  { %v774_v49 = vadd.f32 %v772_v34, %v764_v20  ;;  %v773_v53 = vadd.f32 %v771_v21, %v763_v32 }
 0x168   :  { %v778_v3 = vpop.permute.xlu1 %777  ;;  %v776_v30 = vpop.permute.xlu0 %775 }
 0x169   :  { %v782_v4 = vmul.f32 %v2668_v35, %v778_v3  ;;  %v781_v29 = vmul.f32 %v2669_v18, %v776_v30  ;;  %v2674_v3 = vld [vmem:[#allocation28_spill] sm:$0xff]  ;;  %v2680_v35 = vld [vmem:[#allocation34_spill] sm:$0xff]  ;;  %v2681_v18 = vld [vmem:[#allocation35_spill] sm:$0xff] }
 0x16a   :  { %v808_v30 = vmul.f32 %v1260_v16, %v2674_v3  ;;  %v2686_v16 = vld [vmem:[#allocation40_spill] sm:$0xff] }
 0x16b   :  { %v784_v50 = vadd.f32 %v782_v4, %v774_v49  ;;  %v783_v57 = vadd.f32 %v781_v29, %v773_v53 }
 0x16c   :  { %v788_v8 = vpop.permute.xlu1 %787  ;;  %v786_v38 = vpop.permute.xlu0 %785 }
 0x16d   :  { %v792_v39 = vmul.f32 %v2670_v52, %v788_v8  ;;  %v791_v54 = vmul.f32 %v2671_v40, %v786_v38 }
 0x16f   :  { %v794_v59 = vadd.f32 %v792_v39, %v784_v50  ;;  %v793_v41 = vadd.f32 %v791_v54, %v783_v57  ;;  %v2682_v50 = vld [vmem:[#allocation36_spill] sm:$0xff] }
 0x170   :  { %v798_v37 = vpop.permute.xlu1 %797  ;;  %v796_v47 = vpop.permute.xlu0 %795 }
 0x171   :  { %v802_v11 = vmul.f32 %v2672_v28, %v798_v37  ;;  %v801_v58 = vmul.f32 %v2673_v15, %v796_v47  ;;  %v2683_v28 = vld [vmem:[#allocation37_spill] sm:$0xff] }
 0x173   :  { %v804_v27 = vadd.f32 %v802_v11, %v794_v59  ;;  %v803_v0 = vadd.f32 %v801_v58, %v793_v41 }
 0x174   :  { %v814_v55 = vpop.permute.xlu1 %813  ;;  %v812_v63 = vpop.permute.xlu0 %811 }
 0x175   :  { %v810_v38 = vadd.f32 %v808_v30, %v804_v27  ;;  %v818_v1 = vmul.f32 %v2676_v36, %v814_v55  ;;  %v809_v45 = vadd.f32 %v807_v43, %v803_v0  ;;  %v817_v33 = vmul.f32 %v2677_v31, %v812_v63  ;;  %v2685_v27 = vld [vmem:[#allocation39_spill] sm:$0xff]  ;;  %v2687_v30 = vld [vmem:[#allocation41_spill] sm:$0xff] }
 0x177   :  { %v820_v20 = vadd.f32 %v818_v1, %v810_v38  ;;  %v819_v32 = vadd.f32 %v817_v33, %v809_v45 }
 0x178   :  { %v824_v12 = vpop.permute.xlu1 %823  ;;  %v822_v24 = vpop.permute.xlu0 %821 }
 0x179   :  { %v828_v34 = vmul.f32 %v2678_v5, %v824_v12  ;;  %v827_v21 = vmul.f32 %v2679_v17, %v822_v24  ;;  %v2684_v12 = vld [vmem:[#allocation38_spill] sm:$0xff]  ;;  %v2690_v17 = vld [vmem:[#allocation44_spill] sm:$0xff] }
 0x17a   :  { %v878_v24 = vmul.f32 %v2684_v12, %v2222_v10  ;;  %v2688_v10 = vld [vmem:[#allocation42_spill] sm:$0xff] }
 0x17b   :  { %v830_v49 = vadd.f32 %v828_v34, %v820_v20  ;;  %v829_v53 = vadd.f32 %v827_v21, %v819_v32  ;;  %v2689_v34 = vld [vmem:[#allocation43_spill] sm:$0xff] }
 0x17c   :  { %v834_v7 = vpop.permute.xlu1 %833  ;;  %v832_v8 = vpop.permute.xlu0 %831 }
 0x17d   :  { %v838_v4 = vmul.f32 %v2680_v35, %v834_v7  ;;  %v837_v29 = vmul.f32 %v2681_v18, %v832_v8  ;;  %v2692_v18 = vld [vmem:[#allocation46_spill] sm:$0xff] }
 0x17f   :  { %v840_v55 = vadd.f32 %v838_v4, %v830_v49  ;;  %v839_v63 = vadd.f32 %v837_v29, %v829_v53  ;;  %v2693_v49 = vld [vmem:[#allocation47_spill] sm:$0xff] }
 0x180   :  { %v848_v37 = vpop.permute.xlu1 %847  ;;  %v846_v47 = vpop.permute.xlu0 %845 }
 0x181   :  { %v852_v52 = vmul.f32 %v1967_v48, %v848_v37  ;;  %v851_v39 = vmul.f32 %v1972_v14, %v846_v47  ;;  %v877_v48 = vmul.f32 %v2685_v27, %v2226_v13  ;;  %v2691_v37 = vld [vmem:[#allocation45_spill] sm:$0xff] }
 0x183   :  { %v854_v15 = vadd.f32 %v852_v52, %v840_v55  ;;  %v853_v58 = vadd.f32 %v851_v39, %v839_v63  ;;  %v2695_v55 = vld [vmem:[#allocation49_spill] sm:$0xff] }
 0x184   :  { %v858_v40 = vpop.permute.xlu1 %857  ;;  %v856_v54 = vpop.permute.xlu0 %855 }
 0x185   :  { %v862_v57 = vmul.f32 %v2682_v50, %v858_v40  ;;  %v861_v11 = vmul.f32 %v2683_v28, %v856_v54  ;;  %v2694_v40 = vld [vmem:[#allocation48_spill] sm:$0xff] }
 0x187   :  { %v864_v0 = vadd.f32 %v862_v57, %v854_v15  ;;  %v863_v14 = vadd.f32 %v861_v11, %v853_v58  ;;  %v2696_v15 = vld [vmem:[#allocation50_spill] sm:$0xff] }
 0x188   :  { %v868_v59 = vpop.permute.xlu1 %867  ;;  %v866_v41 = vpop.permute.xlu0 %865 }
 0x189   :  { %v872_v3 = vmul.f32 %v2686_v16, %v868_v59  ;;  %v871_v61 = vmul.f32 %v2687_v30, %v866_v41  ;;  %v2697_v59 = vld [vmem:[#allocation51_spill] sm:$0xff]  ;;  %v2699_v16 = vld [vmem:[#allocation53_spill] sm:$0xff] }
 0x18b   :  { %v874_v6 = vadd.f32 %v872_v3, %v864_v0  ;;  %v873_v43 = vadd.f32 %v871_v61, %v863_v14  ;;  %v2698_v0 = vld [vmem:[#allocation52_spill] sm:$0xff]  ;;  %v947_v3 = vmul.f32 %v2699_v16, %v2334_v19 }
 0x18c   :  { %v884_v7 = vpop.permute.xlu1 %883  ;;  %v882_v8 = vpop.permute.xlu0 %881  ;;  %v948_v14 = vmul.f32 %v2698_v0, %v2330_v44  ;;  %v2702_v44 = vld [vmem:[#allocation56_spill] sm:$0xff] }
 0x18d   :  { %v880_v38 = vadd.f32 %v878_v24, %v874_v6  ;;  %v879_v36 = vadd.f32 %v877_v48, %v873_v43  ;;  %v888_v5 = vmul.f32 %v2688_v10, %v884_v7  ;;  %v887_v13 = vmul.f32 %v2689_v34, %v882_v8  ;;  %v2700_v6 = vld [vmem:[#allocation54_spill] sm:$0xff]  ;;  %v2701_v7 = vld [vmem:[#allocation55_spill] sm:$0xff] }
 0x18f   :  { %v890_v35 = vadd.f32 %v888_v5, %v880_v38  ;;  %v889_v4 = vadd.f32 %v887_v13, %v879_v36 }
 0x190   :  { %v894_v1 = vpop.permute.xlu1 %893  ;;  %v892_v45 = vpop.permute.xlu0 %891 }
 0x191   :  { %v898_v21 = vmul.f32 %v2690_v17, %v894_v1  ;;  %v897_v47 = vmul.f32 %v2691_v37, %v892_v45  ;;  %v2704_v37 = vld [vmem:[#allocation58_spill] sm:$0xff] }
 0x193   :  { %v900_v52 = vadd.f32 %v898_v21, %v890_v35  ;;  %v899_v39 = vadd.f32 %v897_v47, %v889_v4  ;;  %v2703_v21 = vld [vmem:[#allocation57_spill] sm:$0xff] }
 0x194   :  { %v904_v31 = vpop.permute.xlu1 %903  ;;  %v902_v33 = vpop.permute.xlu0 %901 }
 0x195   :  { %v908_v29 = vmul.f32 %v2692_v18, %v904_v31  ;;  %v907_v53 = vmul.f32 %v2693_v49, %v902_v33  ;;  %v2706_v49 = vld [vmem:[#allocation60_spill] sm:$0xff] }
 0x197   :  { %v910_v28 = vadd.f32 %v908_v29, %v900_v52  ;;  %v909_v11 = vadd.f32 %v907_v53, %v899_v39  ;;  %v2707_v52 = vld [vmem:[#allocation61_spill] sm:$0xff] }
 0x198   :  { %v918_v20 = vpop.permute.xlu1 %917  ;;  %v916_v32 = vpop.permute.xlu0 %915 }
 0x199   :  { %v922_v54 = vmul.f32 %v2694_v40, %v918_v20  ;;  %v921_v63 = vmul.f32 %v2695_v55, %v916_v32  ;;  %v2705_v20 = vld [vmem:[#allocation59_spill] sm:$0xff] }
 0x19b   :  { %v924_v12 = vadd.f32 %v922_v54, %v910_v28  ;;  %v923_v24 = vadd.f32 %v921_v63, %v909_v11 }
 0x19c   :  { %v928_v50 = vpop.permute.xlu1 %927  ;;  %v926_v57 = vpop.permute.xlu0 %925 }
 0x19d   :  { %v932_v58 = vmul.f32 %v2696_v15, %v928_v50  ;;  %v931_v41 = vmul.f32 %v2697_v59, %v926_v57 }
 0x19f   :  { %v934_v30 = vadd.f32 %v932_v58, %v924_v12  ;;  %v933_v61 = vadd.f32 %v931_v41, %v923_v24 }
 0x1a0   :  { %v938_v27 = vpop.permute.xlu1 %937  ;;  %v936_v48 = vpop.permute.xlu0 %935 }
 0x1a1   :  { %v942_v43 = vmul.f32 %v2700_v6, %v938_v27  ;;  %v941_v8 = vmul.f32 %v2701_v7, %v936_v48  ;;  %v1018_v27 = vmul.f32 %v2235_v9, %v2380_v42  ;;  %v2708_v6 = vld [vmem:[#allocation62_spill] sm:$0xff]  ;;  %v2709_v7 = vld [vmem:[#allocation63_spill] sm:$0xff] }
 0x1a3   :  { %v944_v38 = vadd.f32 %v942_v43, %v934_v30  ;;  %v943_v36 = vadd.f32 %v941_v8, %v933_v61 }
 0x1a4   :  { %v954_v1 = vpop.permute.xlu1 %953  ;;  %v952_v45 = vpop.permute.xlu0 %951 }
 0x1a5   :  { %v950_v31 = vadd.f32 %v948_v14, %v944_v38  ;;  %v949_v33 = vadd.f32 %v947_v3, %v943_v36  ;;  %v958_v17 = vmul.f32 %v2702_v44, %v954_v1  ;;  %v957_v19 = vmul.f32 %v2703_v21, %v952_v45  ;;  %v2710_v38 = vld [vmem:[#allocation64_spill] sm:$0xff] }
 0x1a7   :  { %v960_v18 = vadd.f32 %v958_v17, %v950_v31  ;;  %v959_v29 = vadd.f32 %v957_v19, %v949_v33 }
 0x1a8   :  { %v964_v10 = vpop.permute.xlu1 %963  ;;  %v962_v5 = vpop.permute.xlu0 %961 }
 0x1a9   :  { %v968_v47 = vmul.f32 %v2704_v37, %v964_v10  ;;  %v967_v32 = vmul.f32 %v2705_v20, %v962_v5 }
 0x1ab   :  { %v970_v40 = vadd.f32 %v968_v47, %v960_v18  ;;  %v969_v54 = vadd.f32 %v967_v32, %v959_v29 }
 0x1ac   :  { %v974_v34 = vpop.permute.xlu1 %973  ;;  %v972_v13 = vpop.permute.xlu0 %971 }
 0x1ad   :  { %v978_v53 = vmul.f32 %v2706_v49, %v974_v34  ;;  %v977_v39 = vmul.f32 %v2707_v52, %v972_v13 }
 0x1af   :  { %v980_v28 = vadd.f32 %v978_v53, %v970_v40  ;;  %v979_v11 = vadd.f32 %v977_v39, %v969_v54 }
 0x1b0   :  { %v988_v35 = vpop.permute.xlu1 %987  ;;  %v986_v4 = vpop.permute.xlu0 %985 }
 0x1b1   :  { %v992_v55 = vmul.f32 %v2197_v22, %v988_v35  ;;  %v991_v63 = vmul.f32 %v2202_v2, %v986_v4  ;;  %v1017_v22 = vmul.f32 %v2240_v51, %v2384_v60  ;;  %v2711_v60 = vld [vmem:[#allocation65_spill] sm:$0xff] }
 0x1b3   :  { %v994_v59 = vadd.f32 %v992_v55, %v980_v28  ;;  %v993_v41 = vadd.f32 %v991_v63, %v979_v11 }
 0x1b4   :  { %v998_v50 = vpop.permute.xlu1 %997  ;;  %v996_v57 = vpop.permute.xlu0 %995 }
 0x1b5   :  { %v1002_v15 = vmul.f32 %v2213_v56, %v998_v50  ;;  %v1001_v58 = vmul.f32 %v2218_v25, %v996_v57 }
 0x1b7   :  { %v1004_v48 = vadd.f32 %v1002_v15, %v994_v59  ;;  %v1003_v2 = vadd.f32 %v1001_v58, %v993_v41 }
 0x1b8   :  { %v1008_v12 = vpop.permute.xlu1 %1007  ;;  %v1006_v24 = vpop.permute.xlu0 %1005 }
 0x1b9   :  { %v1012_v0 = vmul.f32 %v2249_v23, %v1008_v12  ;;  %v1011_v14 = vmul.f32 %v2254_v62, %v1006_v24 }
 0x1bb   :  { %v1014_v16 = vadd.f32 %v1012_v0, %v1004_v48  ;;  %v1013_v56 = vadd.f32 %v1011_v14, %v1003_v2 }
 0x1bc   :  { %v1024_v3 = vpop.permute.xlu1 %1023  ;;  %v1022_v25 = vpop.permute.xlu0 %1021 }
 0x1bd   :  { %v1020_v30 = vadd.f32 %v1018_v27, %v1014_v16  ;;  %v1019_v61 = vadd.f32 %v1017_v22, %v1013_v56  ;;  %v1028_v43 = vmul.f32 %v2708_v6, %v1024_v3  ;;  %v1027_v8 = vmul.f32 %v2709_v7, %v1022_v25 }
 0x1bf   :  { %v1030_v1 = vadd.f32 %v1028_v43, %v1020_v30  ;;  %v1029_v23 = vadd.f32 %v1027_v8, %v1019_v61 }
 0x1c0   :  { %v1034_v9 = vpop.permute.xlu1 %1033  ;;  %v1032_v42 = vpop.permute.xlu0 %1031 }
 0x1c1   :  { %v1038_v51 = vmul.f32 %v2710_v38, %v1034_v9  ;;  %v1037_v36 = vmul.f32 %v2711_v60, %v1032_v42 }
 0x1c3   :  { %v1040_v31 = vadd.f32 %v1038_v51, %v1030_v1  ;;  %v1039_v33 = vadd.f32 %v1037_v36, %v1029_v23 }
 0x1c4   :  { %v1044_v45 = vpop.permute.xlu1 %1043  ;;  %v1042_v62 = vpop.permute.xlu0 %1041 }
 0x1c5   :  { %v1048_v10 = vmul.f32 %v2301_v46, %v1044_v45  ;;  %v1047_v5 = vmul.f32 %v2306_v26, %v1042_v62 }
 0x1c7   :  { %v1050_v34 = vadd.f32 %v1048_v10, %v1040_v31  ;;  %v1049_v13 = vadd.f32 %v1047_v5, %v1039_v33 }
 0x1c9   :  { %1253 = vst [vmem:[%s2519_s3 + $0x18] sm:$0xff] %v1050_v34  ;;  %1252 = vst [vmem:[%s2519_s3 + $0x10] sm:$0xff] %v1049_v13 }

</bundles_post_ra>
